<compile_context>
chip_gen: v7x
topology: tpu7x:2x2x1
jax: 0.10.0
libtpu: 0.0.40
codegen_flags: <defaults>
</compile_context>

<pallas_src>
import functools

import jax
import jax.numpy as jnp
from jax.experimental import pallas as pl
from jax.experimental.pallas import tpu as pltpu

SMEM = pltpu.MemorySpace.SMEM

_LANE = 128
_SUB = 16          # row multiple (bf16-friendly sublane packing)
_EPS = 1e-12


# ---------------- small shape helpers (glue) ----------------

def _ceil_to(v, m):
    return -(-v // m) * m


def _row_tile(rows):
    for cand in (512, 256, 128, 64, 32, 16):
        if rows % cand == 0:
            return cand
    return rows


def _to_slab(x):
    """Flatten any contiguous array to a lane-dense (rows, 128) slab."""
    flat = x.reshape(-1)
    n = flat.shape[0]
    rows = _ceil_to(_ceil_to(n, _LANE) // _LANE, _SUB)
    pad = rows * _LANE - n
    if pad:
        flat = jnp.pad(flat, (0, pad))
    return flat.reshape(rows, _LANE), n


def _from_slab(slab, numel, shape):
    return slab.reshape(-1)[:numel].reshape(shape)


def _im2col_nhwc(x, padding, kh, kw):
    # x holds bf16 integer codes; patches are built on codes (half the bytes of
    # the previous f32 path).  TODO(synk): fuse this into the matmul's input
    # pipeline via shifted row-window DMAs to avoid the KH*KW HBM expansion.
    n, h, w, c = x.shape
    xp = jnp.pad(x, ((0, 0), (padding, padding), (padding, padding), (0, 0)))
    oh = h + 2 * padding - kh + 1
    ow = w + 2 * padding - kw + 1
    cols = [xp[:, i:i + oh, j:j + ow, :] for i in range(kh) for j in range(kw)]
    patches = jnp.stack(cols, axis=3)                       # (N, OH, OW, KH*KW, C)
    return patches.reshape(n * oh * ow, kh * kw * c), oh, ow


# ---------------- Pallas kernels ----------------

def _qmm1_kernel(scale_ref, a_ref, b_ref, y_ref, mx_ref, *, out_const):
    """Single-K-step: codes @ codes on the MXU, epilogue scale + per-tile max."""
    acc = jnp.dot(a_ref[...], b_ref[...], preferred_element_type=jnp.float32)
    s = jnp.maximum(scale_ref[0, 0], _EPS)
    y = acc * (s * out_const)
    y_ref[...] = y
    mx_ref[...] = jnp.full(mx_ref.shape, jnp.max(jnp.abs(y)), dtype=jnp.float32)


def _qmmk_kernel(scale_ref, a_ref, b_ref, y_ref, mx_ref, acc_ref, *, out_const):
    """General multi-K-step variant (not exercised by this network)."""
    k = pl.program_id(1)

    @pl.when(k == 0)
    def _():
        acc_ref[...] = jnp.zeros_like(acc_ref)

    acc_ref[...] += jnp.dot(a_ref[...], b_ref[...],
                            preferred_element_type=jnp.float32)

    @pl.when(k == pl.num_programs(1) - 1)
    def _():
        s = jnp.maximum(scale_ref[0, 0], _EPS)
        y = acc_ref[...] * (s * out_const)
        y_ref[...] = y
        mx_ref[...] = jnp.full(mx_ref.shape, jnp.max(jnp.abs(y)),
                               dtype=jnp.float32)


def _quant_kernel(scale_ref, x_ref, o_ref, *, qmax, relu):
    """f32 values -> integer codes (optionally fused ReLU)."""
    s = jnp.maximum(scale_ref[0, 0], _EPS)
    codes = jnp.clip(jnp.round(x_ref[...] * (qmax / s)), -qmax, qmax)
    if relu:
        codes = jnp.maximum(codes, 0.0)
    o_ref[...] = codes.astype(o_ref.dtype)


def _relu_kernel(x_ref, o_ref):
    o_ref[...] = jnp.maximum(x_ref[...], 0).astype(o_ref.dtype)


def _add_maxabs_kernel(steps_ref, a_ref, b_ref, y_ref, mx_ref):
    """Dequant-add two code tensors with their own steps + per-tile max|y|."""
    y = (a_ref[...].astype(jnp.float32) * steps_ref[0, 0]
         + b_ref[...].astype(jnp.float32) * steps_ref[0, 1])
    y_ref[...] = y
    mx_ref[...] = jnp.full(mx_ref.shape, jnp.max(jnp.abs(y)), dtype=jnp.float32)


def _halfmax_kernel(x_ref, o_ref, *, half):
    x = x_ref[...]
    o_ref[...] = jnp.maximum(x[:, :half], x[:, half:])


# ---------------- pallas_call wrappers ----------------

def fused_code_matmul(a_codes, b_codes, in_scale, in_bit, w_step):
    """(A codes) @ (B codes) with epilogue dequant-scale and max|y| reduction.

    Returns (y_pad (M_pad, N_pad) f32, y_scale scalar f32).
    """
    m, k = a_codes.shape
    kb, n = b_codes.shape
    assert k == kb
    in_qmax = float(2 ** (in_bit - 1) - 1)
    mm_dtype = (jnp.bfloat16
                if (a_codes.dtype == jnp.bfloat16 and b_codes.dtype == jnp.bfloat16)
                else jnp.float32)

    n_pad = _ceil_to(n, _LANE)                 # lane-dense output (unmasked vst)
    tm = min(256, _ceil_to(m, _SUB))           # no over-padding of small batches
    m_pad = _ceil_to(m, tm)
    k_pad = _ceil_to(k, _LANE)
    tk = min(512, k_pad)
    k_pad = _ceil_to(k_pad, tk)
    k_steps = k_pad // tk
    m_tiles = m_pad // tm

    a_p = jnp.pad(a_codes.astype(mm_dtype), ((0, m_pad - m), (0, k_pad - k)))
    b_p = jnp.pad(b_codes.astype(mm_dtype), ((0, k_pad - k), (0, n_pad - n)))
    scale = jnp.asarray(in_scale, jnp.float32).reshape(1, 1)
    out_const = float(w_step) / in_qmax

    out_shape = [jax.ShapeDtypeStruct((m_pad, n_pad), jnp.float32),
                 jax.ShapeDtypeStruct((m_tiles * 8, _LANE), jnp.float32)]

    if k_steps == 1:
        # Weights resident (constant block index), no accumulator scratch,
        # per-M-tile maxima, M axis parallel across TensorCores.
        y_pad, mx = pl.pallas_call(
            functools.partial(_qmm1_kernel, out_const=out_const),
            grid=(m_tiles,),
            in_specs=[
                pl.BlockSpec((1, 1), lambda i: (0, 0), memory_space=SMEM),
                pl.BlockSpec((tm, k_pad), lambda i: (i, 0)),
                pl.BlockSpec((k_pad, n_pad), lambda i: (0, 0)),   # resident B
            ],
            out_specs=[
                pl.BlockSpec((tm, n_pad), lambda i: (i, 0)),
                pl.BlockSpec((8, _LANE), lambda i: (i, 0)),
            ],
            out_shape=out_shape,
            compiler_params=pltpu.CompilerParams(
                dimension_semantics=("parallel",)),
        )(scale, a_p, b_p)
    else:
        y_pad, mx = pl.pallas_call(
            functools.partial(_qmmk_kernel, out_const=out_const),
            grid=(m_tiles, k_steps),
            in_specs=[
                pl.BlockSpec((1, 1), lambda i, kk: (0, 0), memory_space=SMEM),
                pl.BlockSpec((tm, tk), lambda i, kk: (i, kk)),
                pl.BlockSpec((tk, n_pad), lambda i, kk: (kk, 0)),
            ],
            out_specs=[
                pl.BlockSpec((tm, n_pad), lambda i, kk: (i, 0)),
                pl.BlockSpec((8, _LANE), lambda i, kk: (i, 0)),
            ],
            out_shape=out_shape,
            scratch_shapes=[pltpu.VMEM((tm, n_pad), jnp.float32)],
            compiler_params=pltpu.CompilerParams(
                dimension_semantics=("parallel", "arbitrary")),
        )(scale, a_p, b_p)
    return y_pad, jnp.max(mx)


def pallas_quantize_to_codes(y2d, scale, bit, relu=False):
    """Lane-dense tiled quantization of f32 values to integer codes."""
    rows, cols = y2d.shape
    tr = _row_tile(rows)
    qmax = float(2 ** (bit - 1) - 1)
    out_dtype = jnp.bfloat16 if qmax <= 256.0 else jnp.float32
    scale = jnp.asarray(scale, jnp.float32).reshape(1, 1)
    return pl.pallas_call(
        functools.partial(_quant_kernel, qmax=qmax, relu=relu),
        grid=(rows // tr,),
        in_specs=[pl.BlockSpec((1, 1), lambda i: (0, 0), memory_space=SMEM),
                  pl.BlockSpec((tr, cols), lambda i: (i, 0))],
        out_specs=pl.BlockSpec((tr, cols), lambda i: (i, 0)),
        out_shape=jax.ShapeDtypeStruct((rows, cols), out_dtype),
        compiler_params=pltpu.CompilerParams(dimension_semantics=("parallel",)),
    )(scale, y2d.astype(jnp.float32))


def pallas_relu_codes(slab):
    rows, cols = slab.shape
    tr = _row_tile(rows)
    return pl.pallas_call(
        _relu_kernel,
        grid=(rows // tr,),
        in_specs=[pl.BlockSpec((tr, cols), lambda i: (i, 0))],
        out_specs=pl.BlockSpec((tr, cols), lambda i: (i, 0)),
        out_shape=jax.ShapeDtypeStruct((rows, cols), slab.dtype),
        compiler_params=pltpu.CompilerParams(dimension_semantics=("parallel",)),
    )(slab)


def pallas_add_maxabs(a_slab, b_slab, steps):
    """Fused dequant-add of two code slabs + per-tile max|y| (M axis parallel)."""
    rows, cols = a_slab.shape
    tr = _row_tile(rows)
    ntiles = rows // tr
    y, mx = pl.pallas_call(
        _add_maxabs_kernel,
        grid=(ntiles,),
        in_specs=[pl.BlockSpec((1, 2), lambda i: (0, 0), memory_space=SMEM),
                  pl.BlockSpec((tr, cols), lambda i: (i, 0)),
                  pl.BlockSpec((tr, cols), lambda i: (i, 0))],
        out_specs=[pl.BlockSpec((tr, cols), lambda i: (i, 0)),
                   pl.BlockSpec((8, _LANE), lambda i: (i, 0))],
        out_shape=[jax.ShapeDtypeStruct((rows, cols), jnp.float32),
                   jax.ShapeDtypeStruct((ntiles * 8, _LANE), jnp.float32)],
        compiler_params=pltpu.CompilerParams(dimension_semantics=("parallel",)),
    )(steps, a_slab, b_slab)
    return y, jnp.max(mx)


def _halfmax_call(x2d):
    rows, cols = x2d.shape
    tr = _row_tile(rows)
    half = cols // 2
    return pl.pallas_call(
        functools.partial(_halfmax_kernel, half=half),
        grid=(rows // tr,),
        in_specs=[pl.BlockSpec((tr, cols), lambda i: (i, 0))],
        out_specs=pl.BlockSpec((tr, half), lambda i: (i, 0)),
        out_shape=jax.ShapeDtypeStruct((rows, half), x2d.dtype),
        compiler_params=pltpu.CompilerParams(dimension_semantics=("parallel",)),
    )(x2d)


def pallas_maxpool2x2_nhwc(codes):
    """2x2/stride-2 max pool on codes: two single-stream pairwise-max kernels
    over free contiguous reshapes (no strided slices, no extra pads)."""
    n, h, w, c = codes.shape
    assert h % 2 == 0 and w % 2 == 0, "2x2/stride-2 pooling needs even H and W"
    v = _halfmax_call(codes.reshape(n * (h // 2), 2 * w * c))      # H-pair max
    o = _halfmax_call(v.reshape(n * (h // 2) * (w // 2), 2 * c))   # W-pair max
    return o.reshape(n, h // 2, w // 2, c)


# ---------------- Simplified MNSIM quantize layers ----------------

class _Act:
    """Quantized activation: value = codes * (scale / (2**(bit-1) - 1))."""

    def __init__(self, codes, scale, bit):
        self.codes = codes
        self.scale = scale
        self.bit = bit

    def step(self):
        return jnp.maximum(self.scale, _EPS) / float(2 ** (self.bit - 1) - 1)


class QuantizeLayer:
    """Simplified MNSIM QuantizeLayer (conv / fc), SINGLE_FIX_TEST mode."""
    # TODO(synk): the real MNSIM.Interface.quantize module (crossbar bit-slicing,
    # sublayer weight splitting, ADC 'SCALE'/'FIX_TRAIN' internals) is not
    # available; symmetric fixed-point quantization of activations/weights is
    # used around the exact conv/fc compute.

    def __init__(self, key, hardware_config, layer_config, quantize_config):
        self.layer_config = dict(layer_config)
        self.hardware_config = dict(hardware_config)
        self.quantize_config = dict(quantize_config)
        self.fuse_relu = False
        wb = quantize_config['weight_bit']
        lt = layer_config['type']
        if lt == 'conv':
            shape = (layer_config['out_channels'], layer_config['in_channels'],
                     layer_config['kernel_size'], layer_config['kernel_size'])
        elif lt == 'fc':
            shape = (layer_config['out_features'], layer_config['in_features'])
        else:
            raise AssertionError(f"not support {lt}")
        w = 0.1 * jax.random.normal(key, shape, dtype=jnp.float32)
        qmax = float(2 ** (wb - 1) - 1)
        absmax = jnp.maximum(jnp.max(jnp.abs(w)), _EPS)
        step = absmax / qmax
        codes = jnp.clip(jnp.round(w / step), -qmax, qmax)
        self.w_step = float(step)                      # static (init-time)
        if lt == 'conv':
            ksz = layer_config['kernel_size']
            codes = codes.transpose(2, 3, 1, 0).reshape(
                ksz * ksz * layer_config['in_channels'],
                layer_config['out_channels'])
        else:
            # fc in_features are taken in NHWC-flatten order (matches 'view').
            # TODO(synk): when loading NCHW-trained weights, permute the
            # in_features columns once here; random init needs no permutation.
            codes = codes.T
        code_dtype = jnp.bfloat16 if qmax <= 256.0 else jnp.float32
        self.w_codes = codes.astype(code_dtype)        # integer codes exact in bf16

    def forward(self, act, method='SINGLE_FIX_TEST', adc_action='SCALE'):
        assert method == 'SINGLE_FIX_TEST'
        act_bit = self.quantize_config['activation_bit']
        lt = self.layer_config['type']
        if lt == 'conv':
            ksz = self.layer_config['kernel_size']
            pad = self.layer_config.get('padding', 0)
            n = act.codes.shape[0]
            oc = self.layer_config['out_channels']
            a, oh, ow = _im2col_nhwc(act.codes, pad, ksz, ksz)
        else:
            n = act.codes.shape[0]
            oc = self.layer_config['out_features']
            a = act.codes
        m_true = a.shape[0]
        # one fused call: MXU matmul on codes -> epilogue scale + per-tile max|y|
        y_pad, y_scale = fused_code_matmul(a, self.w_codes, act.scale,
                                           act.bit, self.w_step)
        # one lane-dense call: output quantization (+ fused relu when safe)
        codes = pallas_quantize_to_codes(y_pad, y_scale, act_bit,
                                         relu=self.fuse_relu)
        codes = codes[:m_true, :oc]
        if lt == 'conv':
            codes = codes.reshape(n, oh, ow, oc)
        return _Act(codes, y_scale, act_bit)


class StraightLayer:
    """Simplified MNSIM StraightLayer (relu / pooling / view / element_sum)."""

    def __init__(self, hardware_config, layer_config, quantize_config):
        self.layer_config = dict(layer_config)
        self.hardware_config = dict(hardware_config)
        self.quantize_config = dict(quantize_config)
        self.passthrough = False   # set when the relu is fused into the producer

    def forward(self, act, method='SINGLE_FIX_TEST', adc_action='SCALE'):
        t = self.layer_config['type']
        if t == 'relu':
            if self.passthrough:              # fused into the previous layer
                return act
            slab, numel = _to_slab(act.codes)
            out = pallas_relu_codes(slab)
            return _Act(_from_slab(out, numel, act.codes.shape),
                        act.scale, act.bit)
        if t == 'pooling':
            assert self.layer_config['kernel_size'] == 2
            return _Act(pallas_maxpool2x2_nhwc(act.codes), act.scale, act.bit)
        if t == 'view':
            # NHWC flatten, no runtime transpose (fc weights match this order)
            codes = act.codes.reshape(act.codes.shape[0], -1)
            return _Act(codes, act.scale, act.bit)
        if t == 'element_sum':
            a, b = act
            assert a.codes.shape == b.codes.shape
            bit = self.quantize_config['activation_bit']
            sa, numel = _to_slab(a.codes)
            sb, _ = _to_slab(b.codes)
            steps = jnp.stack([a.step(), b.step()]).reshape(1, 2).astype(jnp.float32)
            y2, y_scale = pallas_add_maxabs(sa, sb, steps)   # fused dequant-add+max
            codes2 = pallas_quantize_to_codes(y2, y_scale, bit)
            return _Act(_from_slab(codes2, numel, a.codes.shape), y_scale, bit)
        raise AssertionError(f'not support {t}')


class NetworkGraph:
    def __init__(self, hardware_config, layer_config_list, quantize_config_list,
                 input_index_list, input_params, key):
        assert len(layer_config_list) == len(quantize_config_list)
        assert len(layer_config_list) == len(input_index_list)
        self.layer_list = []
        keys = jax.random.split(key, len(layer_config_list))
        for k, layer_config, quantize_config in zip(keys, layer_config_list,
                                                    quantize_config_list):
            assert 'type' in layer_config
            if layer_config['type'] in ('conv', 'fc'):
                layer = QuantizeLayer(k, hardware_config, layer_config,
                                      quantize_config)
            else:
                layer = StraightLayer(hardware_config, layer_config,
                                      quantize_config)
            self.layer_list.append(layer)
        self.input_index_list = [list(t) for t in input_index_list]
        self.input_params = dict(input_params)

        # Fuse relu into the preceding conv/fc output-quantize pass when the
        # conv/fc output is consumed only by that relu (exact: relu commutes
        # with symmetric quantization and leaves the scale unchanged).
        consumers = {}
        for j, idxs in enumerate(self.input_index_list):
            for idx in idxs:
                consumers.setdefault(idx + j + 1, []).append(j)
        for j, layer in enumerate(self.layer_list):
            if (isinstance(layer, StraightLayer)
                    and layer.layer_config['type'] == 'relu'
                    and self.input_index_list[j] == [-1] and j >= 1
                    and isinstance(self.layer_list[j - 1], QuantizeLayer)
                    and consumers.get(j, []) == [j]):
                self.layer_list[j - 1].fuse_relu = True
                layer.passthrough = True

    def forward(self, x, method='SINGLE_FIX_TEST', adc_action='SCALE'):
        in_scale = jnp.asarray(self.input_params['activation_scale'], jnp.float32)
        in_bit = self.input_params['activation_bit']
        if x.ndim == 4:                       # external NCHW -> internal NHWC
            x = jnp.transpose(x.astype(jnp.float32), (0, 2, 3, 1))
        else:
            x = x.astype(jnp.float32)
        # entry quantization (equals the first QuantizeLayer's input quantize)
        slab, numel = _to_slab(x)
        codes = _from_slab(pallas_quantize_to_codes(slab, in_scale, in_bit),
                           numel, x.shape)
        tensor_list = [_Act(codes, in_scale, in_bit)]
        for i, layer in enumerate(self.layer_list):
            input_index = self.input_index_list[i]
            assert len(input_index) in [1, 2]
            if len(input_index) == 1:
                inp = tensor_list[input_index[0] + i + 1]
            else:
                inp = [tensor_list[input_index[0] + i + 1],
                       tensor_list[input_index[1] + i + 1]]
            tensor_list.append(layer.forward(inp, method, adc_action))
        out = tensor_list[-1]
        qmax = float(2 ** (out.bit - 1) - 1)
        return out.codes.astype(jnp.float32) * (jnp.maximum(out.scale, _EPS) / qmax)


if __name__ == "__main__":
    key = jax.random.PRNGKey(0)
    k_x, k_w = jax.random.split(key)

    N, C, H, W = 2, 4, 16, 16
    x = jax.random.normal(k_x, (N, C, H, W), dtype=jnp.float32)

    hardware_config = {'xbar_size': 256, 'input_bit': 2, 'weight_bit': 1,
                       'quantize_bit': 10}
    layer_config_list = [
        {'type': 'conv', 'in_channels': C, 'out_channels': 8, 'kernel_size': 3, 'padding': 1},
        {'type': 'relu'},
        {'type': 'conv', 'in_channels': 8, 'out_channels': 8, 'kernel_size': 3, 'padding': 1},
        {'type': 'relu'},
        {'type': 'element_sum'},
        {'type': 'pooling', 'mode': 'MAX', 'kernel_size': 2, 'stride': 2},
        {'type': 'view'},
        {'type': 'fc', 'in_features': 8 * (H // 2) * (W // 2), 'out_features': 10},
    ]
    quantize_config_list = [{'weight_bit': 9, 'activation_bit': 9, 'point_shift': -2}
                            for _ in layer_config_list]
    # residual add consumes layer-3 (relu) and layer-1 (relu) outputs
    input_index_list = [[-1], [-1], [-1], [-1], [-1, -3], [-1], [-1], [-1]]
    input_params = {'activation_scale': 3.0, 'activation_bit': 9,
                    'input_shape': (N, C, H, W)}

    net = NetworkGraph(hardware_config, layer_config_list, quantize_config_list,
                       input_index_list, input_params, k_w)

    fwd = jax.jit(lambda inp: net.forward(inp, method='SINGLE_FIX_TEST',
                                          adc_action='SCALE'))
    out = jax.block_until_ready(fwd(x))
    assert out.shape == (N, 10) and out.dtype == jnp.float32
    assert bool(jnp.all(jnp.isfinite(out)))
    print("KERNEL_OK")
</pallas_src>

<mosaic_0001>
module attributes {stable_mosaic.version = 11 : i64} {
  func.func @_quant_kernel(%arg0: i32, %arg1: memref<1x1xf32, #tpu.memory_space<smem>>, %arg2: memref<16x128xf32, #tpu.memory_space<vmem>>, %arg3: memref<16x128xbf16, #tpu.memory_space<vmem>>) attributes {dimension_semantics = [#tpu.dimension_semantics<parallel>], iteration_bounds = array<i64: 1>, scalar_prefetch = 0 : i64, scratch_operands = 0 : i64, tpu.core_type = #tpu.core_type<tc>, window_params = [{transform_indices = @transform_0, window_bounds = array<i64: 1, 1>}, {transform_indices = @transform_1, window_bounds = array<i64: 16, 128>}, {transform_indices = @transform_2, window_bounds = array<i64: 16, 128>}]} {
    %c0 = arith.constant 0 : index
    %c0_0 = arith.constant 0 : index
    %0 = memref.load %arg1[%c0, %c0_0] : memref<1x1xf32, #tpu.memory_space<smem>>
    %cst = arith.constant 9.99999996E-13 : f32
    %1 = arith.maximumf %0, %cst : f32
    %c0_1 = arith.constant 0 : index
    %c0_2 = arith.constant 0 : index
    %2 = vector.load %arg2[%c0_1, %c0_2] : memref<16x128xf32, #tpu.memory_space<vmem>>, vector<16x128xf32>
    %cst_3 = arith.constant 2.550000e+02 : f32
    %3 = arith.divf %cst_3, %1 : f32
    %4 = vector.broadcast %3 : f32 to vector<16x128xf32>
    %5 = arith.mulf %2, %4 : vector<16x128xf32>
    %6 = math.roundeven %5 : vector<16x128xf32>
    %cst_4 = arith.constant -2.550000e+02 : f32
    %cst_5 = arith.constant 2.550000e+02 : f32
    %7 = vector.broadcast %cst_4 : f32 to vector<16x128xf32>
    %8 = arith.maximumf %7, %6 : vector<16x128xf32>
    %9 = vector.broadcast %cst_5 : f32 to vector<16x128xf32>
    %10 = arith.minimumf %9, %8 : vector<16x128xf32>
    %11 = arith.truncf %10 : vector<16x128xf32> to vector<16x128xbf16>
    %c0_6 = arith.constant 0 : index
    %c0_7 = arith.constant 0 : index
    %12 = vector.load %arg3[%c0_6, %c0_7] : memref<16x128xbf16, #tpu.memory_space<vmem>>, vector<16x128xbf16>
    tpu.vector_store %arg3[%c0_6, %c0_7], %11 {strides = array<i32>} : memref<16x128xbf16, #tpu.memory_space<vmem>>, vector<16x128xbf16>,
    return
  }
  func.func @transform_0(%arg0: i32) -> (i32, i32) {
    %c0_i32 = arith.constant 0 : i32
    %c0_i32_0 = arith.constant 0 : i32
    %c0_i32_1 = arith.constant 0 : i32
    return %c0_i32, %c0_i32_0 : i32, i32
  }
  func.func @transform_1(%arg0: i32) -> (i32, i32) {
    %c0_i32 = arith.constant 0 : i32
    %c0_i32_0 = arith.constant 0 : i32
    return %arg0, %c0_i32 : i32, i32
  }
  func.func @transform_2(%arg0: i32) -> (i32, i32) {
    %c0_i32 = arith.constant 0 : i32
    %c0_i32_0 = arith.constant 0 : i32
    return %arg0, %c0_i32 : i32, i32
  }
}

module attributes {stable_mosaic.version = 11 : i64} {
  func.func @_qmm1_kernel(%arg0: i32, %arg1: memref<1x1xf32, #tpu.memory_space<smem>>, %arg2: memref<256x128xbf16, #tpu.memory_space<vmem>>, %arg3: memref<128x128xbf16, #tpu.memory_space<vmem>>, %arg4: memref<256x128xf32, #tpu.memory_space<vmem>>, %arg5: memref<8x128xf32, #tpu.memory_space<vmem>>) attributes {dimension_semantics = [#tpu.dimension_semantics<parallel>], iteration_bounds = array<i64: 2>, scalar_prefetch = 0 : i64, scratch_operands = 0 : i64, tpu.core_type = #tpu.core_type<tc>, window_params = [{transform_indices = @transform_0, window_bounds = array<i64: 1, 1>}, {transform_indices = @transform_1, window_bounds = array<i64: 256, 128>}, {pipeline_mode = #tpu.pipeline_mode<synchronous>, transform_indices = @transform_2, window_bounds = array<i64: 128, 128>}, {transform_indices = @transform_3, window_bounds = array<i64: 256, 128>}, {transform_indices = @transform_4, window_bounds = array<i64: 8, 128>}]} {
    %c0 = arith.constant 0 : index
    %c0_0 = arith.constant 0 : index
    %0 = vector.load %arg2[%c0, %c0_0] : memref<256x128xbf16, #tpu.memory_space<vmem>>, vector<256x128xbf16>
    %c0_1 = arith.constant 0 : index
    %c0_2 = arith.constant 0 : index
    %1 = vector.load %arg3[%c0_1, %c0_2] : memref<128x128xbf16, #tpu.memory_space<vmem>>, vector<128x128xbf16>
    %cst = arith.constant dense<0.000000e+00> : vector<256x128xf32>
    %2 = tpu.matmul %0, %1, %cst {dimension_numbers = #tpu.dot_dimension_numbers<[1], [0], [0], [1], [0, 0, 1, 1], [], []>} : vector<256x128xbf16>, vector<128x128xbf16>, vector<256x128xf32> -> vector<256x128xf32>
    %c0_3 = arith.constant 0 : index
    %c0_4 = arith.constant 0 : index
    %3 = memref.load %arg1[%c0_3, %c0_4] : memref<1x1xf32, #tpu.memory_space<smem>>
    %cst_5 = arith.constant 9.99999996E-13 : f32
    %4 = arith.maximumf %3, %cst_5 : f32
    %cst_6 = arith.constant 4.73432556E-6 : f32
    %5 = arith.mulf %4, %cst_6 : f32
    %6 = vector.broadcast %5 : f32 to vector<256x128xf32>
    %7 = arith.mulf %2, %6 : vector<256x128xf32>
    %c0_7 = arith.constant 0 : index
    %c0_8 = arith.constant 0 : index
    %8 = vector.load %arg4[%c0_7, %c0_8] : memref<256x128xf32, #tpu.memory_space<vmem>>, vector<256x128xf32>
    tpu.vector_store %arg4[%c0_7, %c0_8], %7 {strides = array<i32>} : memref<256x128xf32, #tpu.memory_space<vmem>>, vector<256x128xf32>,
    %9 = math.absf %7 : vector<256x128xf32>
    %10 = vector.shape_cast %9 : vector<256x128xf32> to vector<1x256x128xf32>
    %cst_9 = arith.constant dense<0xFF800000> : vector<1xf32>
    %11 = vector.multi_reduction <maximumf>, %10, %cst_9 [1, 2] : vector<1x256x128xf32> to vector<1xf32>
    %12 = vector.shape_cast %11 : vector<1xf32> to vector<1x1x1xf32>
    %13 = vector.extract %12[0, 0, 0] : f32 from vector<1x1x1xf32>
    %14 = vector.broadcast %13 : f32 to vector<8x128xf32>
    %c0_10 = arith.constant 0 : index
    %c0_11 = arith.constant 0 : index
    %15 = vector.load %arg5[%c0_10, %c0_11] : memref<8x128xf32, #tpu.memory_space<vmem>>, vector<8x128xf32>
    tpu.vector_store %arg5[%c0_10, %c0_11], %14 {strides = array<i32>} : memref<8x128xf32, #tpu.memory_space<vmem>>, vector<8x128xf32>,
    return
  }
  func.func @transform_0(%arg0: i32) -> (i32, i32) {
    %c0_i32 = arith.constant 0 : i32
    %c0_i32_0 = arith.constant 0 : i32
    %c0_i32_1 = arith.constant 0 : i32
    return %c0_i32, %c0_i32_0 : i32, i32
  }
  func.func @transform_1(%arg0: i32) -> (i32, i32) {
    %c0_i32 = arith.constant 0 : i32
    %c0_i32_0 = arith.constant 0 : i32
    return %arg0, %c0_i32 : i32, i32
  }
  func.func @transform_2(%arg0: i32) -> (i32, i32) {
    %c0_i32 = arith.constant 0 : i32
    %c0_i32_0 = arith.constant 0 : i32
    %c0_i32_1 = arith.constant 0 : i32
    return %c0_i32, %c0_i32_0 : i32, i32
  }
  func.func @transform_3(%arg0: i32) -> (i32, i32) {
    %c0_i32 = arith.constant 0 : i32
    %c0_i32_0 = arith.constant 0 : i32
    return %arg0, %c0_i32 : i32, i32
  }
  func.func @transform_4(%arg0: i32) -> (i32, i32) {
    %c0_i32 = arith.constant 0 : i32
    %c0_i32_0 = arith.constant 0 : i32
    return %arg0, %c0_i32 : i32, i32
  }
}

module attributes {stable_mosaic.version = 11 : i64} {
  func.func @_quant_kernel(%arg0: i32, %arg1: memref<1x1xf32, #tpu.memory_space<smem>>, %arg2: memref<512x128xf32, #tpu.memory_space<vmem>>, %arg3: memref<512x128xbf16, #tpu.memory_space<vmem>>) attributes {dimension_semantics = [#tpu.dimension_semantics<parallel>], iteration_bounds = array<i64: 1>, scalar_prefetch = 0 : i64, scratch_operands = 0 : i64, tpu.core_type = #tpu.core_type<tc>, window_params = [{transform_indices = @transform_0, window_bounds = array<i64: 1, 1>}, {transform_indices = @transform_1, window_bounds = array<i64: 512, 128>}, {transform_indices = @transform_2, window_bounds = array<i64: 512, 128>}]} {
    %c0 = arith.constant 0 : index
    %c0_0 = arith.constant 0 : index
    %0 = memref.load %arg1[%c0, %c0_0] : memref<1x1xf32, #tpu.memory_space<smem>>
    %cst = arith.constant 9.99999996E-13 : f32
    %1 = arith.maximumf %0, %cst : f32
    %c0_1 = arith.constant 0 : index
    %c0_2 = arith.constant 0 : index
    %2 = vector.load %arg2[%c0_1, %c0_2] : memref<512x128xf32, #tpu.memory_space<vmem>>, vector<512x128xf32>
    %cst_3 = arith.constant 2.550000e+02 : f32
    %3 = arith.divf %cst_3, %1 : f32
    %4 = vector.broadcast %3 : f32 to vector<512x128xf32>
    %5 = arith.mulf %2, %4 : vector<512x128xf32>
    %6 = math.roundeven %5 : vector<512x128xf32>
    %cst_4 = arith.constant -2.550000e+02 : f32
    %cst_5 = arith.constant 2.550000e+02 : f32
    %7 = vector.broadcast %cst_4 : f32 to vector<512x128xf32>
    %8 = arith.maximumf %7, %6 : vector<512x128xf32>
    %9 = vector.broadcast %cst_5 : f32 to vector<512x128xf32>
    %10 = arith.minimumf %9, %8 : vector<512x128xf32>
    %cst_6 = arith.constant 0.000000e+00 : f32
    %11 = vector.broadcast %cst_6 : f32 to vector<512x128xf32>
    %12 = arith.maximumf %10, %11 : vector<512x128xf32>
    %13 = arith.truncf %12 : vector<512x128xf32> to vector<512x128xbf16>
    %c0_7 = arith.constant 0 : index
    %c0_8 = arith.constant 0 : index
    %14 = vector.load %arg3[%c0_7, %c0_8] : memref<512x128xbf16, #tpu.memory_space<vmem>>, vector<512x128xbf16>
    tpu.vector_store %arg3[%c0_7, %c0_8], %13 {strides = array<i32>} : memref<512x128xbf16, #tpu.memory_space<vmem>>, vector<512x128xbf16>,
    return
  }
  func.func @transform_0(%arg0: i32) -> (i32, i32) {
    %c0_i32 = arith.constant 0 : i32
    %c0_i32_0 = arith.constant 0 : i32
    %c0_i32_1 = arith.constant 0 : i32
    return %c0_i32, %c0_i32_0 : i32, i32
  }
  func.func @transform_1(%arg0: i32) -> (i32, i32) {
    %c0_i32 = arith.constant 0 : i32
    %c0_i32_0 = arith.constant 0 : i32
    return %arg0, %c0_i32 : i32, i32
  }
  func.func @transform_2(%arg0: i32) -> (i32, i32) {
    %c0_i32 = arith.constant 0 : i32
    %c0_i32_0 = arith.constant 0 : i32
    return %arg0, %c0_i32 : i32, i32
  }
}

module attributes {stable_mosaic.version = 11 : i64} {
  func.func @_qmm1_kernel(%arg0: i32, %arg1: memref<1x1xf32, #tpu.memory_space<smem>>, %arg2: memref<256x128xbf16, #tpu.memory_space<vmem>>, %arg3: memref<128x128xbf16, #tpu.memory_space<vmem>>, %arg4: memref<256x128xf32, #tpu.memory_space<vmem>>, %arg5: memref<8x128xf32, #tpu.memory_space<vmem>>) attributes {dimension_semantics = [#tpu.dimension_semantics<parallel>], iteration_bounds = array<i64: 2>, scalar_prefetch = 0 : i64, scratch_operands = 0 : i64, tpu.core_type = #tpu.core_type<tc>, window_params = [{transform_indices = @transform_0, window_bounds = array<i64: 1, 1>}, {transform_indices = @transform_1, window_bounds = array<i64: 256, 128>}, {pipeline_mode = #tpu.pipeline_mode<synchronous>, transform_indices = @transform_2, window_bounds = array<i64: 128, 128>}, {transform_indices = @transform_3, window_bounds = array<i64: 256, 128>}, {transform_indices = @transform_4, window_bounds = array<i64: 8, 128>}]} {
    %c0 = arith.constant 0 : index
    %c0_0 = arith.constant 0 : index
    %0 = vector.load %arg2[%c0, %c0_0] : memref<256x128xbf16, #tpu.memory_space<vmem>>, vector<256x128xbf16>
    %c0_1 = arith.constant 0 : index
    %c0_2 = arith.constant 0 : index
    %1 = vector.load %arg3[%c0_1, %c0_2] : memref<128x128xbf16, #tpu.memory_space<vmem>>, vector<128x128xbf16>
    %cst = arith.constant dense<0.000000e+00> : vector<256x128xf32>
    %2 = tpu.matmul %0, %1, %cst {dimension_numbers = #tpu.dot_dimension_numbers<[1], [0], [0], [1], [0, 0, 1, 1], [], []>} : vector<256x128xbf16>, vector<128x128xbf16>, vector<256x128xf32> -> vector<256x128xf32>
    %c0_3 = arith.constant 0 : index
    %c0_4 = arith.constant 0 : index
    %3 = memref.load %arg1[%c0_3, %c0_4] : memref<1x1xf32, #tpu.memory_space<smem>>
    %cst_5 = arith.constant 9.99999996E-13 : f32
    %4 = arith.maximumf %3, %cst_5 : f32
    %cst_6 = arith.constant 4.08502228E-6 : f32
    %5 = arith.mulf %4, %cst_6 : f32
    %6 = vector.broadcast %5 : f32 to vector<256x128xf32>
    %7 = arith.mulf %2, %6 : vector<256x128xf32>
    %c0_7 = arith.constant 0 : index
    %c0_8 = arith.constant 0 : index
    %8 = vector.load %arg4[%c0_7, %c0_8] : memref<256x128xf32, #tpu.memory_space<vmem>>, vector<256x128xf32>
    tpu.vector_store %arg4[%c0_7, %c0_8], %7 {strides = array<i32>} : memref<256x128xf32, #tpu.memory_space<vmem>>, vector<256x128xf32>,
    %9 = math.absf %7 : vector<256x128xf32>
    %10 = vector.shape_cast %9 : vector<256x128xf32> to vector<1x256x128xf32>
    %cst_9 = arith.constant dense<0xFF800000> : vector<1xf32>
    %11 = vector.multi_reduction <maximumf>, %10, %cst_9 [1, 2] : vector<1x256x128xf32> to vector<1xf32>
    %12 = vector.shape_cast %11 : vector<1xf32> to vector<1x1x1xf32>
    %13 = vector.extract %12[0, 0, 0] : f32 from vector<1x1x1xf32>
    %14 = vector.broadcast %13 : f32 to vector<8x128xf32>
    %c0_10 = arith.constant 0 : index
    %c0_11 = arith.constant 0 : index
    %15 = vector.load %arg5[%c0_10, %c0_11] : memref<8x128xf32, #tpu.memory_space<vmem>>, vector<8x128xf32>
    tpu.vector_store %arg5[%c0_10, %c0_11], %14 {strides = array<i32>} : memref<8x128xf32, #tpu.memory_space<vmem>>, vector<8x128xf32>,
    return
  }
  func.func @transform_0(%arg0: i32) -> (i32, i32) {
    %c0_i32 = arith.constant 0 : i32
    %c0_i32_0 = arith.constant 0 : i32
    %c0_i32_1 = arith.constant 0 : i32
    return %c0_i32, %c0_i32_0 : i32, i32
  }
  func.func @transform_1(%arg0: i32) -> (i32, i32) {
    %c0_i32 = arith.constant 0 : i32
    %c0_i32_0 = arith.constant 0 : i32
    return %arg0, %c0_i32 : i32, i32
  }
  func.func @transform_2(%arg0: i32) -> (i32, i32) {
    %c0_i32 = arith.constant 0 : i32
    %c0_i32_0 = arith.constant 0 : i32
    %c0_i32_1 = arith.constant 0 : i32
    return %c0_i32, %c0_i32_0 : i32, i32
  }
  func.func @transform_3(%arg0: i32) -> (i32, i32) {
    %c0_i32 = arith.constant 0 : i32
    %c0_i32_0 = arith.constant 0 : i32
    return %arg0, %c0_i32 : i32, i32
  }
  func.func @transform_4(%arg0: i32) -> (i32, i32) {
    %c0_i32 = arith.constant 0 : i32
    %c0_i32_0 = arith.constant 0 : i32
    return %arg0, %c0_i32 : i32, i32
  }
}

module attributes {stable_mosaic.version = 11 : i64} {
  func.func @_add_maxabs_kernel(%arg0: i32, %arg1: memref<1x2xf32, #tpu.memory_space<smem>>, %arg2: memref<32x128xbf16, #tpu.memory_space<vmem>>, %arg3: memref<32x128xbf16, #tpu.memory_space<vmem>>, %arg4: memref<32x128xf32, #tpu.memory_space<vmem>>, %arg5: memref<8x128xf32, #tpu.memory_space<vmem>>) attributes {dimension_semantics = [#tpu.dimension_semantics<parallel>], iteration_bounds = array<i64: 1>, scalar_prefetch = 0 : i64, scratch_operands = 0 : i64, tpu.core_type = #tpu.core_type<tc>, window_params = [{transform_indices = @transform_0, window_bounds = array<i64: 1, 2>}, {transform_indices = @transform_1, window_bounds = array<i64: 32, 128>}, {transform_indices = @transform_2, window_bounds = array<i64: 32, 128>}, {transform_indices = @transform_3, window_bounds = array<i64: 32, 128>}, {transform_indices = @transform_4, window_bounds = array<i64: 8, 128>}]} {
    %c0 = arith.constant 0 : index
    %c0_0 = arith.constant 0 : index
    %0 = vector.load %arg2[%c0, %c0_0] : memref<32x128xbf16, #tpu.memory_space<vmem>>, vector<32x128xbf16>
    %1 = arith.extf %0 : vector<32x128xbf16> to vector<32x128xf32>
    %c0_1 = arith.constant 0 : index
    %c0_2 = arith.constant 0 : index
    %2 = memref.load %arg1[%c0_1, %c0_2] : memref<1x2xf32, #tpu.memory_space<smem>>
    %3 = vector.broadcast %2 : f32 to vector<32x128xf32>
    %4 = arith.mulf %1, %3 : vector<32x128xf32>
    %c0_3 = arith.constant 0 : index
    %c0_4 = arith.constant 0 : index
    %5 = vector.load %arg3[%c0_3, %c0_4] : memref<32x128xbf16, #tpu.memory_space<vmem>>, vector<32x128xbf16>
    %6 = arith.extf %5 : vector<32x128xbf16> to vector<32x128xf32>
    %c0_5 = arith.constant 0 : index
    %c1 = arith.constant 1 : index
    %7 = memref.load %arg1[%c0_5, %c1] : memref<1x2xf32, #tpu.memory_space<smem>>
    %8 = vector.broadcast %7 : f32 to vector<32x128xf32>
    %9 = arith.mulf %6, %8 : vector<32x128xf32>
    %10 = arith.addf %4, %9 : vector<32x128xf32>
    %c0_6 = arith.constant 0 : index
    %c0_7 = arith.constant 0 : index
    %11 = vector.load %arg4[%c0_6, %c0_7] : memref<32x128xf32, #tpu.memory_space<vmem>>, vector<32x128xf32>
    tpu.vector_store %arg4[%c0_6, %c0_7], %10 {strides = array<i32>} : memref<32x128xf32, #tpu.memory_space<vmem>>, vector<32x128xf32>,
    %12 = math.absf %10 : vector<32x128xf32>
    %13 = vector.shape_cast %12 : vector<32x128xf32> to vector<1x32x128xf32>
    %cst = arith.constant dense<0xFF800000> : vector<1xf32>
    %14 = vector.multi_reduction <maximumf>, %13, %cst [1, 2] : vector<1x32x128xf32> to vector<1xf32>
    %15 = vector.shape_cast %14 : vector<1xf32> to vector<1x1x1xf32>
    %16 = vector.extract %15[0, 0, 0] : f32 from vector<1x1x1xf32>
    %17 = vector.broadcast %16 : f32 to vector<8x128xf32>
    %c0_8 = arith.constant 0 : index
    %c0_9 = arith.constant 0 : index
    %18 = vector.load %arg5[%c0_8, %c0_9] : memref<8x128xf32, #tpu.memory_space<vmem>>, vector<8x128xf32>
    tpu.vector_store %arg5[%c0_8, %c0_9], %17 {strides = array<i32>} : memref<8x128xf32, #tpu.memory_space<vmem>>, vector<8x128xf32>,
    return
  }
  func.func @transform_0(%arg0: i32) -> (i32, i32) {
    %c0_i32 = arith.constant 0 : i32
    %c0_i32_0 = arith.constant 0 : i32
    %c0_i32_1 = arith.constant 0 : i32
    return %c0_i32, %c0_i32_0 : i32, i32
  }
  func.func @transform_1(%arg0: i32) -> (i32, i32) {
    %c0_i32 = arith.constant 0 : i32
    %c0_i32_0 = arith.constant 0 : i32
    return %arg0, %c0_i32 : i32, i32
  }
  func.func @transform_2(%arg0: i32) -> (i32, i32) {
    %c0_i32 = arith.constant 0 : i32
    %c0_i32_0 = arith.constant 0 : i32
    return %arg0, %c0_i32 : i32, i32
  }
  func.func @transform_3(%arg0: i32) -> (i32, i32) {
    %c0_i32 = arith.constant 0 : i32
    %c0_i32_0 = arith.constant 0 : i32
    return %arg0, %c0_i32 : i32, i32
  }
  func.func @transform_4(%arg0: i32) -> (i32, i32) {
    %c0_i32 = arith.constant 0 : i32
    %c0_i32_0 = arith.constant 0 : i32
    return %arg0, %c0_i32 : i32, i32
  }
}

module attributes {stable_mosaic.version = 11 : i64} {
  func.func @_quant_kernel(%arg0: i32, %arg1: memref<1x1xf32, #tpu.memory_space<smem>>, %arg2: memref<32x128xf32, #tpu.memory_space<vmem>>, %arg3: memref<32x128xbf16, #tpu.memory_space<vmem>>) attributes {dimension_semantics = [#tpu.dimension_semantics<parallel>], iteration_bounds = array<i64: 1>, scalar_prefetch = 0 : i64, scratch_operands = 0 : i64, tpu.core_type = #tpu.core_type<tc>, window_params = [{transform_indices = @transform_0, window_bounds = array<i64: 1, 1>}, {transform_indices = @transform_1, window_bounds = array<i64: 32, 128>}, {transform_indices = @transform_2, window_bounds = array<i64: 32, 128>}]} {
    %c0 = arith.constant 0 : index
    %c0_0 = arith.constant 0 : index
    %0 = memref.load %arg1[%c0, %c0_0] : memref<1x1xf32, #tpu.memory_space<smem>>
    %cst = arith.constant 9.99999996E-13 : f32
    %1 = arith.maximumf %0, %cst : f32
    %c0_1 = arith.constant 0 : index
    %c0_2 = arith.constant 0 : index
    %2 = vector.load %arg2[%c0_1, %c0_2] : memref<32x128xf32, #tpu.memory_space<vmem>>, vector<32x128xf32>
    %cst_3 = arith.constant 2.550000e+02 : f32
    %3 = arith.divf %cst_3, %1 : f32
    %4 = vector.broadcast %3 : f32 to vector<32x128xf32>
    %5 = arith.mulf %2, %4 : vector<32x128xf32>
    %6 = math.roundeven %5 : vector<32x128xf32>
    %cst_4 = arith.constant -2.550000e+02 : f32
    %cst_5 = arith.constant 2.550000e+02 : f32
    %7 = vector.broadcast %cst_4 : f32 to vector<32x128xf32>
    %8 = arith.maximumf %7, %6 : vector<32x128xf32>
    %9 = vector.broadcast %cst_5 : f32 to vector<32x128xf32>
    %10 = arith.minimumf %9, %8 : vector<32x128xf32>
    %11 = arith.truncf %10 : vector<32x128xf32> to vector<32x128xbf16>
    %c0_6 = arith.constant 0 : index
    %c0_7 = arith.constant 0 : index
    %12 = vector.load %arg3[%c0_6, %c0_7] : memref<32x128xbf16, #tpu.memory_space<vmem>>, vector<32x128xbf16>
    tpu.vector_store %arg3[%c0_6, %c0_7], %11 {strides = array<i32>} : memref<32x128xbf16, #tpu.memory_space<vmem>>, vector<32x128xbf16>,
    return
  }
  func.func @transform_0(%arg0: i32) -> (i32, i32) {
    %c0_i32 = arith.constant 0 : i32
    %c0_i32_0 = arith.constant 0 : i32
    %c0_i32_1 = arith.constant 0 : i32
    return %c0_i32, %c0_i32_0 : i32, i32
  }
  func.func @transform_1(%arg0: i32) -> (i32, i32) {
    %c0_i32 = arith.constant 0 : i32
    %c0_i32_0 = arith.constant 0 : i32
    return %arg0, %c0_i32 : i32, i32
  }
  func.func @transform_2(%arg0: i32) -> (i32, i32) {
    %c0_i32 = arith.constant 0 : i32
    %c0_i32_0 = arith.constant 0 : i32
    return %arg0, %c0_i32 : i32, i32
  }
}

module attributes {stable_mosaic.version = 11 : i64} {
  func.func @_halfmax_kernel(%arg0: i32, %arg1: memref<16x256xbf16, #tpu.memory_space<vmem>>, %arg2: memref<16x128xbf16, #tpu.memory_space<vmem>>) attributes {dimension_semantics = [#tpu.dimension_semantics<parallel>], iteration_bounds = array<i64: 1>, scalar_prefetch = 0 : i64, scratch_operands = 0 : i64, tpu.core_type = #tpu.core_type<tc>, window_params = [{transform_indices = @transform_0, window_bounds = array<i64: 16, 256>}, {transform_indices = @transform_1, window_bounds = array<i64: 16, 128>}]} {
    %c0 = arith.constant 0 : index
    %c0_0 = arith.constant 0 : index
    %0 = vector.load %arg1[%c0, %c0_0] : memref<16x256xbf16, #tpu.memory_space<vmem>>, vector<16x256xbf16>
    %1 = vector.extract_strided_slice %0 {offsets = [0, 0], sizes = [16, 128], strides = [1, 1]} : vector<16x256xbf16> to vector<16x128xbf16>
    %2 = vector.extract_strided_slice %0 {offsets = [0, 128], sizes = [16, 128], strides = [1, 1]} : vector<16x256xbf16> to vector<16x128xbf16>
    %3 = arith.maximumf %1, %2 : vector<16x128xbf16>
    %c0_1 = arith.constant 0 : index
    %c0_2 = arith.constant 0 : index
    %4 = vector.load %arg2[%c0_1, %c0_2] : memref<16x128xbf16, #tpu.memory_space<vmem>>, vector<16x128xbf16>
    tpu.vector_store %arg2[%c0_1, %c0_2], %3 {strides = array<i32>} : memref<16x128xbf16, #tpu.memory_space<vmem>>, vector<16x128xbf16>,
    return
  }
  func.func @transform_0(%arg0: i32) -> (i32, i32) {
    %c0_i32 = arith.constant 0 : i32
    %c0_i32_0 = arith.constant 0 : i32
    return %arg0, %c0_i32 : i32, i32
  }
  func.func @transform_1(%arg0: i32) -> (i32, i32) {
    %c0_i32 = arith.constant 0 : i32
    %c0_i32_0 = arith.constant 0 : i32
    return %arg0, %c0_i32 : i32, i32
  }
}

module attributes {stable_mosaic.version = 11 : i64} {
  func.func @_halfmax_kernel(%arg0: i32, %arg1: memref<128x16xbf16, #tpu.memory_space<vmem>>, %arg2: memref<128x8xbf16, #tpu.memory_space<vmem>>) attributes {dimension_semantics = [#tpu.dimension_semantics<parallel>], iteration_bounds = array<i64: 1>, scalar_prefetch = 0 : i64, scratch_operands = 0 : i64, tpu.core_type = #tpu.core_type<tc>, window_params = [{transform_indices = @transform_0, window_bounds = array<i64: 128, 16>}, {transform_indices = @transform_1, window_bounds = array<i64: 128, 8>}]} {
    %c0 = arith.constant 0 : index
    %c0_0 = arith.constant 0 : index
    %0 = vector.load %arg1[%c0, %c0_0] : memref<128x16xbf16, #tpu.memory_space<vmem>>, vector<128x16xbf16>
    %1 = vector.extract_strided_slice %0 {offsets = [0, 0], sizes = [128, 8], strides = [1, 1]} : vector<128x16xbf16> to vector<128x8xbf16>
    %2 = vector.extract_strided_slice %0 {offsets = [0, 8], sizes = [128, 8], strides = [1, 1]} : vector<128x16xbf16> to vector<128x8xbf16>
    %3 = arith.maximumf %1, %2 : vector<128x8xbf16>
    %c0_1 = arith.constant 0 : index
    %c0_2 = arith.constant 0 : index
    %4 = vector.load %arg2[%c0_1, %c0_2] : memref<128x8xbf16, #tpu.memory_space<vmem>>, vector<128x8xbf16>
    tpu.vector_store %arg2[%c0_1, %c0_2], %3 {strides = array<i32>} : memref<128x8xbf16, #tpu.memory_space<vmem>>, vector<128x8xbf16>,
    return
  }
  func.func @transform_0(%arg0: i32) -> (i32, i32) {
    %c0_i32 = arith.constant 0 : i32
    %c0_i32_0 = arith.constant 0 : i32
    return %arg0, %c0_i32 : i32, i32
  }
  func.func @transform_1(%arg0: i32) -> (i32, i32) {
    %c0_i32 = arith.constant 0 : i32
    %c0_i32_0 = arith.constant 0 : i32
    return %arg0, %c0_i32 : i32, i32
  }
}

module attributes {stable_mosaic.version = 11 : i64} {
  func.func @_qmm1_kernel(%arg0: i32, %arg1: memref<1x1xf32, #tpu.memory_space<smem>>, %arg2: memref<16x512xbf16, #tpu.memory_space<vmem>>, %arg3: memref<512x128xbf16, #tpu.memory_space<vmem>>, %arg4: memref<16x128xf32, #tpu.memory_space<vmem>>, %arg5: memref<8x128xf32, #tpu.memory_space<vmem>>) attributes {dimension_semantics = [#tpu.dimension_semantics<parallel>], iteration_bounds = array<i64: 1>, scalar_prefetch = 0 : i64, scratch_operands = 0 : i64, tpu.core_type = #tpu.core_type<tc>, window_params = [{transform_indices = @transform_0, window_bounds = array<i64: 1, 1>}, {transform_indices = @transform_1, window_bounds = array<i64: 16, 512>}, {pipeline_mode = #tpu.pipeline_mode<synchronous>, transform_indices = @transform_2, window_bounds = array<i64: 512, 128>}, {transform_indices = @transform_3, window_bounds = array<i64: 16, 128>}, {transform_indices = @transform_4, window_bounds = array<i64: 8, 128>}]} {
    %c0 = arith.constant 0 : index
    %c0_0 = arith.constant 0 : index
    %0 = vector.load %arg2[%c0, %c0_0] : memref<16x512xbf16, #tpu.memory_space<vmem>>, vector<16x512xbf16>
    %c0_1 = arith.constant 0 : index
    %c0_2 = arith.constant 0 : index
    %1 = vector.load %arg3[%c0_1, %c0_2] : memref<512x128xbf16, #tpu.memory_space<vmem>>, vector<512x128xbf16>
    %cst = arith.constant dense<0.000000e+00> : vector<16x128xf32>
    %2 = tpu.matmul %0, %1, %cst {dimension_numbers = #tpu.dot_dimension_numbers<[1], [0], [0], [1], [0, 0, 1, 1], [], []>} : vector<16x512xbf16>, vector<512x128xbf16>, vector<16x128xf32> -> vector<16x128xf32>
    %c0_3 = arith.constant 0 : index
    %c0_4 = arith.constant 0 : index
    %3 = memref.load %arg1[%c0_3, %c0_4] : memref<1x1xf32, #tpu.memory_space<smem>>
    %cst_5 = arith.constant 9.99999996E-13 : f32
    %4 = arith.maximumf %3, %cst_5 : f32
    %cst_6 = arith.constant 6.60758587E-6 : f32
    %5 = arith.mulf %4, %cst_6 : f32
    %6 = vector.broadcast %5 : f32 to vector<16x128xf32>
    %7 = arith.mulf %2, %6 : vector<16x128xf32>
    %c0_7 = arith.constant 0 : index
    %c0_8 = arith.constant 0 : index
    %8 = vector.load %arg4[%c0_7, %c0_8] : memref<16x128xf32, #tpu.memory_space<vmem>>, vector<16x128xf32>
    tpu.vector_store %arg4[%c0_7, %c0_8], %7 {strides = array<i32>} : memref<16x128xf32, #tpu.memory_space<vmem>>, vector<16x128xf32>,
    %9 = math.absf %7 : vector<16x128xf32>
    %10 = vector.shape_cast %9 : vector<16x128xf32> to vector<1x16x128xf32>
    %cst_9 = arith.constant dense<0xFF800000> : vector<1xf32>
    %11 = vector.multi_reduction <maximumf>, %10, %cst_9 [1, 2] : vector<1x16x128xf32> to vector<1xf32>
    %12 = vector.shape_cast %11 : vector<1xf32> to vector<1x1x1xf32>
    %13 = vector.extract %12[0, 0, 0] : f32 from vector<1x1x1xf32>
    %14 = vector.broadcast %13 : f32 to vector<8x128xf32>
    %c0_10 = arith.constant 0 : index
    %c0_11 = arith.constant 0 : index
    %15 = vector.load %arg5[%c0_10, %c0_11] : memref<8x128xf32, #tpu.memory_space<vmem>>, vector<8x128xf32>
    tpu.vector_store %arg5[%c0_10, %c0_11], %14 {strides = array<i32>} : memref<8x128xf32, #tpu.memory_space<vmem>>, vector<8x128xf32>,
    return
  }
  func.func @transform_0(%arg0: i32) -> (i32, i32) {
    %c0_i32 = arith.constant 0 : i32
    %c0_i32_0 = arith.constant 0 : i32
    %c0_i32_1 = arith.constant 0 : i32
    return %c0_i32, %c0_i32_0 : i32, i32
  }
  func.func @transform_1(%arg0: i32) -> (i32, i32) {
    %c0_i32 = arith.constant 0 : i32
    %c0_i32_0 = arith.constant 0 : i32
    return %arg0, %c0_i32 : i32, i32
  }
  func.func @transform_2(%arg0: i32) -> (i32, i32) {
    %c0_i32 = arith.constant 0 : i32
    %c0_i32_0 = arith.constant 0 : i32
    %c0_i32_1 = arith.constant 0 : i32
    return %c0_i32, %c0_i32_0 : i32, i32
  }
  func.func @transform_3(%arg0: i32) -> (i32, i32) {
    %c0_i32 = arith.constant 0 : i32
    %c0_i32_0 = arith.constant 0 : i32
    return %arg0, %c0_i32 : i32, i32
  }
  func.func @transform_4(%arg0: i32) -> (i32, i32) {
    %c0_i32 = arith.constant 0 : i32
    %c0_i32_0 = arith.constant 0 : i32
    return %arg0, %c0_i32 : i32, i32
  }
}

</mosaic_0001>

<bundles_post_ra>
// kernel: _lambda_.11
= control target key start
LH: loop header
LB: loop body
LE: loop exit
PB: predicated region body
PF: predicated region fallthrough
CT: control target
= control target key end

     0   :  { %s61_s9 = smov 1e-12   ;;  %s89_s0 = inlined_call_operand.<no memory space> [shape: f32[1,1], index: 0, kind: input, shape index: {}]   ;;  %s90_s1 = inlined_call_operand.vmem [shape: f32[16,128], index: 1, kind: input, shape index: {}]   ;;  %s91_s2 = inlined_call_operand.vmem [shape: bf16[16,128], index: 2, kind: output, shape index: {}]  }
   0x1   :  { %s13_s12 = smax.f32 %s61_s9, %s89_s0  ;;  %v14_v2 = vld [vmem:[%s90_s1] sm:$0xff]  ;;  %v15_v3 = vld [vmem:[%s90_s1 + $0x8] sm:$0xff] }
   0x2   :  { %v16_v0 = vstv %s13_s12 }
   0x3   :  { %59 = vrcp.f32 %v16_v0 }
   0xd   :  { %v60_v1 = vpop.eup %59 }
   0xe   :  { %54 = vpush %v60_v1 }
  0x3f   :  { %s55_s13 = spop %54 }
  0x40   :  { %s19_s18 = smul.f32 255.0, %s55_s13 }
  0x42   :  { %v20_v4 = vstv %s19_s18 }
  0x43   :  { %v21_v5 = vmul.f32 %v20_v4, %v14_v2  ;;  %v22_v6 = vmul.f32 %v20_v4, %v15_v3 }
  0x45   :  { %v56_v7 = vround.rtne.f32 %v21_v5  ;;  %v57_v8 = vround.rtne.f32 %v22_v6 }
  0x47   :  { %v43_v9 = vclamps-f32 %v56_v7, 255.0  ;;  %v44_v10 = vclamps-f32 %v57_v8, 255.0 }
  0x49   :  { %v52_v11 = vpack.c.bf16 %v44_v10, %v43_v9 }
  0x4b   :  { %53 = vst [vmem:[%s91_s2] sm:$0xff] %v52_v11  }

// kernel: _lambda_.12
= control target key start
LH: loop header
LB: loop body
LE: loop exit
PB: predicated region body
PF: predicated region fallthrough
CT: control target
= control target key end

     0   :  { %s1009_s17 = smov 0   ;;  %s1180_s0 = inlined_call_operand.<no memory space> [shape: f32[1,1], index: 0, kind: input, shape index: {}]   ;;  %s1181_s1 = inlined_call_operand.vmem [shape: bf16[512,128], index: 1, kind: input, shape index: {}]   ;;  %s1182_s2 = inlined_call_operand.vmem [shape: bf16[128,128], index: 2, kind: input, shape index: {}]   ;;  %s1183_s3 = inlined_call_operand.vmem [shape: f32[512,128], index: 3, kind: output, shape index: {0}]   ;;  %s1184_s4 = inlined_call_operand.vmem [shape: f32[16,128], index: 4, kind: output, shape index: {1}]  }
   0x1   :  { %10 = sst [smem:[#allocation2]] %s1180_s0 }
   0x2 LB: > { %s1015_s18 = sadd.s32 4294967295, %s978_s17   ;;  %p800_p0 = scmp.ge.s32.totalorder %s978_s17, 1  ;;  %s978_s17 = sphi %s1009_s17, %s16_s17  }
   0x3   : > { %p167_p1 = scmp.lt.s32.totalorder %s978_s17, 3 }
   0x5   : > { %p168_p2 = pnand %p800_p0, %p167_p1 }
   0x6   : > { %v931_v0 = vld [vmem:[%s1182_s2] sm:$0xff] (!%p168_p2)   ;;  %s801_s0 = sshll.u32 (!%p168_p2), %s1015_s18, 5  ;;  %v932_v1 = vld [vmem:[%s1182_s2 + $0x8] sm:$0xff] (!%p168_p2)   ;;  %v933_v2 = vld [vmem:[%s1182_s2 + $0x10] sm:$0xff] (!%p168_p2)   ;;  %s567_s13 = sld [smem:[#allocation2]] (!%p168_p2) }
   0x7   : > { %171 = sbr.rel (%p168_p2) target bundleno = 506 (0x1fa), region = 32  ;;  %p198_p3 = scmp.lt.s32.totalorder (!%p168_p2), %s801_s0, 63  ;;  %856 = vmatprep.subr.bf16.mxu0 (!%p168_p2), %v931_v0  ;;  %904 = vmatprep.subr.bf16.mxu1 (!%p168_p2), %v931_v0  ;;  %v934_v3 = vld [vmem:[%s1182_s2 + $0x18] sm:$0xff] (!%p168_p2)   ;;  %v935_v6 = vld [vmem:[%s1182_s2 + $0x20] sm:$0xff] (!%p168_p2)   ;;  %v936_v7 = vld [vmem:[%s1182_s2 + $0x28] sm:$0xff] (!%p168_p2)  }
   0x8   : > { %857 = vmatpush3.bf16.msra.mxu0 (!%p168_p2), %v931_v0  ;;  %912 = vmatpush3.bf16.msra.mxu1 (!%p168_p2), %v931_v0  ;;  %v937_v8 = vld [vmem:[%s1182_s2 + $0x30] sm:$0xff] (!%p168_p2)   ;;  %v938_v9 = vld [vmem:[%s1182_s2 + $0x38] sm:$0xff] (!%p168_p2)   ;;  %s980_s14 = smov (!%p168_p2), 1e-12   ;;  %p209_p4 = scmp.lt.s32.totalorder (!%p168_p2), %s1015_s18, 1 }
   0x9   : > { %858 = vmatprep.subr.bf16.mxu0 (!%p168_p2), %v932_v1  ;;  %905 = vmatprep.subr.bf16.mxu1 (!%p168_p2), %v932_v1 }
   0xc   : > { %859 = vmatpush3.bf16.msra.mxu0 (!%p168_p2), %v932_v1  ;;  %913 = vmatpush3.bf16.msra.mxu1 (!%p168_p2), %v932_v1  ;;  %s568_s15 = smax.f32 (!%p168_p2), %s980_s14, %s567_s13 }
   0xd   : > { %860 = vmatprep.subr.bf16.mxu0 (!%p168_p2), %v933_v2  ;;  %906 = vmatprep.subr.bf16.mxu1 (!%p168_p2), %v933_v2  ;;  %s569_s16 = smul.f32 (!%p168_p2), 4.7343256e-06, %s568_s15 }
   0xe   : > { %s1186_s0 = smov (!%p198_p3, %s801_s0), 63  ;;  %s1188_s18 = smov (!%p209_p4, %s1015_s18), 1 }
   0xf   : > { %s802_s25 = sshll.u32 %s1186_s0, 2  ;;  %s804_s19 = sshll.u32 %s1186_s0, 3  ;;  %v1069_v24 = vstv %s569_s16 }
  0x10   : > { %s1035_s28 = scalar_lea.vmem %s1181_s1, %s802_s25  ;;  %861 = vmatpush3.bf16.msra.mxu0 %v933_v2  ;;  %914 = vmatpush3.bf16.msra.mxu1 %v933_v2  ;;  %s1074_s22 = scalar_lea.vmem %s1183_s3, %s804_s19 }
  0x11   : > { %v939_v4 = vld [vmem:[%s1035_s28] sm:$0xff]   ;;  %862 = vmatprep.subr.bf16.mxu0 %v934_v3  ;;  %907 = vmatprep.subr.bf16.mxu1 %v934_v3  ;;  %v940_v10 = vld [vmem:[%s1035_s28 + $0x8] sm:$0xff]   ;;  %v943_v12 = vld [vmem:[%s1035_s28 + $0x10] sm:$0xff]   ;;  %s805_s0 = sshll.u32 %s1188_s18, 3 }
  0x12   : > { %872 = vmatprep.mubr.bf16.mxu0 %v939_v4  ;;  %v941_v5 = vld [vmem:[%s1035_s28 + $0x40] sm:$0xff]   ;;  %v942_v11 = vld [vmem:[%s1035_s28 + $0x48] sm:$0xff]   ;;  %v945_v13 = vld [vmem:[%s1035_s28 + $0x50] sm:$0xff]   ;;  %s212_s25 = scalar_lea.vmem %s1184_s4, %s805_s0 }
  0x13   : > { %888 = vmatprep.mubr.bf16.mxu1 %v941_v5  ;;  %v944_v14 = vld [vmem:[%s1035_s28 + $0x18] sm:$0xff]   ;;  %v947_v16 = vld [vmem:[%s1035_s28 + $0x20] sm:$0xff]   ;;  %v948_v18 = vld [vmem:[%s1035_s28 + $0x28] sm:$0xff]  }
  0x14   : > { %863 = vmatpush3.bf16.msra.mxu0 %v934_v3  ;;  %915 = vmatpush3.bf16.msra.mxu1 %v934_v3  ;;  %v946_v15 = vld [vmem:[%s1035_s28 + $0x58] sm:$0xff]   ;;  %v949_v17 = vld [vmem:[%s1035_s28 + $0x60] sm:$0xff]   ;;  %v950_v19 = vld [vmem:[%s1035_s28 + $0x68] sm:$0xff]  }
  0x15   : > { %864 = vmatprep.subr.bf16.mxu0 %v935_v6  ;;  %908 = vmatprep.subr.bf16.mxu1 %v935_v6  ;;  %v951_v20 = vld [vmem:[%s1035_s28 + $0x30] sm:$0xff]   ;;  %v952_v22 = vld [vmem:[%s1035_s28 + $0x38] sm:$0xff]  }
  0x16   : > { %v953_v21 = vld [vmem:[%s1035_s28 + $0x70] sm:$0xff]   ;;  %v954_v23 = vld [vmem:[%s1035_s28 + $0x78] sm:$0xff]  }
  0x18   : > { %865 = vmatpush3.bf16.msra.mxu0 %v935_v6  ;;  %916 = vmatpush3.bf16.msra.mxu1 %v935_v6 }
  0x19   : > { %866 = vmatprep.subr.bf16.mxu0 %v936_v7  ;;  %909 = vmatprep.subr.bf16.mxu1 %v936_v7 }
  0x1c   : > { %867 = vmatpush3.bf16.msra.mxu0 %v936_v7  ;;  %917 = vmatpush3.bf16.msra.mxu1 %v936_v7 }
  0x1d   : > { %868 = vmatprep.subr.bf16.mxu0 %v937_v8  ;;  %910 = vmatprep.subr.bf16.mxu1 %v937_v8 }
  0x20   : > { %869 = vmatpush3.bf16.msra.mxu0 %v937_v8  ;;  %918 = vmatpush3.bf16.msra.mxu1 %v937_v8 }
  0x21   : > { %870 = vmatprep.subr.bf16.mxu0 %v938_v9  ;;  %911 = vmatprep.subr.bf16.mxu1 %v938_v9 }
  0x24   : > { %871 = vmatpush3.bf16.msra.mxu0 %v938_v9  ;;  %919 = vmatpush3.bf16.msra.mxu1 %v938_v9 }
  0x27   : > { %873 = vmatmul.mubr.bf16.vlgmr.msra.gmra.mrb[0].mxu0 %v940_v10  ;;  %889 = vmatmul.mubr.bf16.vlgmr.msra.gmra.mrb[0].mxu1 %v942_v11 }
  0x28   : > { %876 = vmatprep.mubr.bf16.mxu0 %v943_v12  ;;  %892 = vmatprep.mubr.bf16.mxu1 %v945_v13 }
  0x2f   : > { %877 = vmatmul.mubr.bf16.gmra.mrb[4].mxu0 %v944_v14  ;;  %893 = vmatmul.mubr.bf16.gmra.mrb[4].mxu1 %v946_v15 }
  0x30   : > { %880 = vmatprep.mubr.bf16.mxu0 %v947_v16  ;;  %896 = vmatprep.mubr.bf16.mxu1 %v949_v17 }
  0x37   : > { %881 = vmatmul.mubr.bf16.gmra.mrb[8].mxu0 %v948_v18  ;;  %897 = vmatmul.mubr.bf16.gmra.mrb[8].mxu1 %v950_v19 }
  0x38   : > { %884 = vmatprep.mubr.bf16.mxu0 %v951_v20  ;;  %900 = vmatprep.mubr.bf16.mxu1 %v953_v21 }
  0x3f   : > { %885 = vmatmul.mubr.bf16.gmra.mrb[12].mxu0 %v952_v22  ;;  %901 = vmatmul.mubr.bf16.gmra.mrb[12].mxu1 %v954_v23 }
  0xfa   : > { %v874_v25 = vpop.f32.mrb[0].mxu0  ;;  %v890_v26 = vpop.f32.mrb[0].mxu1 }
  0xfb   : > { %v573_v27 = vmul.f32 %v874_v25, %v1069_v24  ;;  %v440_v28 = vpop.f32.mrb[1].mxu0  ;;  %v1078_v29 = vmul.f32 %v890_v26, %v1069_v24  ;;  %v504_v30 = vpop.f32.mrb[1].mxu1 }
  0xfc   : > { %v571_v31 = vmul.f32 %v1069_v24, %v440_v28  ;;  %v875_v32 = vpop.f32.mrb[2].mxu0  ;;  %v1082_v33 = vmul.f32 %v1069_v24, %v504_v30  ;;  %v891_v34 = vpop.f32.mrb[2].mxu1 }
  0xfd   : > { %605 = vst [vmem:[%s1074_s22 + $0x10] sm:$0xff] %v573_v27  ;;  %v574_v35 = vmul.f32 %v875_v32, %v1069_v24  ;;  %v443_v36 = vpop.f32.mrb[3].mxu0  ;;  %621 = vst [vmem:[%s1074_s22 + $0x90] sm:$0xff] %v1078_v29  ;;  %v1089_v37 = vmul.f32 %v891_v34, %v1069_v24  ;;  %v507_v38 = vpop.f32.mrb[3].mxu1 }
  0xfe   : > { %603 = vst [vmem:[%s1074_s22] sm:$0xff] %v571_v31  ;;  %v572_v39 = vmul.f32 %v1069_v24, %v443_v36  ;;  %619 = vst [vmem:[%s1074_s22 + $0x80] sm:$0xff] %v1082_v33  ;;  %v1096_v40 = vmul.f32 %v1069_v24, %v507_v38 }
  0xff   : > { %606 = vst [vmem:[%s1074_s22 + $0x18] sm:$0xff] %v574_v35  ;;  %622 = vst [vmem:[%s1074_s22 + $0x98] sm:$0xff] %v1089_v37 }
 0x100   : > { %604 = vst [vmem:[%s1074_s22 + $0x8] sm:$0xff] %v572_v39  ;;  %620 = vst [vmem:[%s1074_s22 + $0x88] sm:$0xff] %v1096_v40 }
 0x102   : > { %v878_v41 = vpop.f32.mrb[4].mxu0  ;;  %v894_v42 = vpop.f32.mrb[4].mxu1 }
 0x103   : > { %v577_v43 = vmul.f32 %v878_v41, %v1069_v24  ;;  %v456_v44 = vpop.f32.mrb[5].mxu0  ;;  %v1106_v45 = vmul.f32 %v894_v42, %v1069_v24  ;;  %v520_v46 = vpop.f32.mrb[5].mxu1 }
 0x104   : > { %v575_v47 = vmul.f32 %v1069_v24, %v456_v44  ;;  %v879_v48 = vpop.f32.mrb[6].mxu0  ;;  %v1110_v49 = vmul.f32 %v1069_v24, %v520_v46  ;;  %v895_v50 = vpop.f32.mrb[6].mxu1 }
 0x105   : > { %609 = vst [vmem:[%s1074_s22 + $0x30] sm:$0xff] %v577_v43  ;;  %v578_v51 = vmul.f32 %v879_v48, %v1069_v24  ;;  %v459_v52 = vpop.f32.mrb[7].mxu0  ;;  %625 = vst [vmem:[%s1074_s22 + $0xb0] sm:$0xff] %v1106_v45  ;;  %v1117_v53 = vmul.f32 %v895_v50, %v1069_v24  ;;  %v523_v54 = vpop.f32.mrb[7].mxu1  ;;  %959 = vmaxabs.init.f32.vacc0 %v573_v27, %v577_v43 }
 0x106   : > { %607 = vst [vmem:[%s1074_s22 + $0x20] sm:$0xff] %v575_v47  ;;  %v576_v55 = vmul.f32 %v1069_v24, %v459_v52  ;;  %623 = vst [vmem:[%s1074_s22 + $0xa0] sm:$0xff] %v1110_v49  ;;  %v1124_v56 = vmul.f32 %v1069_v24, %v523_v54 }
 0x107   : > { %610 = vst [vmem:[%s1074_s22 + $0x38] sm:$0xff] %v578_v51  ;;  %626 = vst [vmem:[%s1074_s22 + $0xb8] sm:$0xff] %v1117_v53  ;;  %960 = vmaxabs.f32.vacc0 %v571_v31, %v575_v47 }
 0x108   : > { %608 = vst [vmem:[%s1074_s22 + $0x28] sm:$0xff] %v576_v55  ;;  %624 = vst [vmem:[%s1074_s22 + $0xa8] sm:$0xff] %v1124_v56 }
 0x109   : > { %961 = vmaxabs.f32.vacc0 %v574_v35, %v578_v51 }
 0x10a   : > { %v882_v57 = vpop.f32.mrb[8].mxu0  ;;  %v898_v58 = vpop.f32.mrb[8].mxu1 }
 0x10b   : > { %962 = vmaxabs.f32.vacc0 %v572_v39, %v576_v55  ;;  %v581_v59 = vmul.f32 %v882_v57, %v1069_v24  ;;  %v472_v60 = vpop.f32.mrb[9].mxu0  ;;  %v597_v61 = vmul.f32 %v898_v58, %v1069_v24  ;;  %v536_v62 = vpop.f32.mrb[9].mxu1 }
 0x10c   : > { %v579_v63 = vmul.f32 %v1069_v24, %v472_v60  ;;  %v883_v0 = vpop.f32.mrb[10].mxu0  ;;  %v595_v1 = vmul.f32 %v1069_v24, %v536_v62  ;;  %v899_v2 = vpop.f32.mrb[10].mxu1 }
 0x10d   : > { %613 = vst [vmem:[%s1074_s22 + $0x50] sm:$0xff] %v581_v59  ;;  %v582_v3 = vmul.f32 %v883_v0, %v1069_v24  ;;  %v475_v4 = vpop.f32.mrb[11].mxu0  ;;  %629 = vst [vmem:[%s1074_s22 + $0xd0] sm:$0xff] %v597_v61  ;;  %v598_v5 = vmul.f32 %v899_v2, %v1069_v24  ;;  %v539_v6 = vpop.f32.mrb[11].mxu1 }
 0x10e   : > { %611 = vst [vmem:[%s1074_s22 + $0x40] sm:$0xff] %v579_v63  ;;  %v580_v7 = vmul.f32 %v1069_v24, %v475_v4  ;;  %627 = vst [vmem:[%s1074_s22 + $0xc0] sm:$0xff] %v595_v1  ;;  %v596_v8 = vmul.f32 %v1069_v24, %v539_v6  ;;  %963 = vmaxabs.f32.vacc0 %v581_v59, %v579_v63 }
 0x10f   : > { %614 = vst [vmem:[%s1074_s22 + $0x58] sm:$0xff] %v582_v3  ;;  %630 = vst [vmem:[%s1074_s22 + $0xd8] sm:$0xff] %v598_v5 }
 0x110   : > { %612 = vst [vmem:[%s1074_s22 + $0x48] sm:$0xff] %v580_v7  ;;  %628 = vst [vmem:[%s1074_s22 + $0xc8] sm:$0xff] %v596_v8  ;;  %964 = vmaxabs.f32.vacc0 %v582_v3, %v580_v7 }
 0x112   : > { %v886_v9 = vpop.f32.mrb[12].mxu0  ;;  %v902_v10 = vpop.f32.mrb[12].mxu1 }
 0x113   : > { %v585_v11 = vmul.f32 %v886_v9, %v1069_v24  ;;  %v488_v12 = vpop.f32.mrb[13].mxu0  ;;  %v601_v13 = vmul.f32 %v902_v10, %v1069_v24  ;;  %v552_v14 = vpop.f32.mrb[13].mxu1 }
 0x114   : > { %v583_v15 = vmul.f32 %v1069_v24, %v488_v12  ;;  %v887_v16 = vpop.f32.mrb[14].mxu0  ;;  %v599_v17 = vmul.f32 %v1069_v24, %v552_v14  ;;  %v903_v18 = vpop.f32.mrb[14].mxu1 }
 0x115   : > { %617 = vst [vmem:[%s1074_s22 + $0x70] sm:$0xff] %v585_v11  ;;  %v586_v19 = vmul.f32 %v887_v16, %v1069_v24  ;;  %v491_v20 = vpop.f32.mrb[15].mxu0  ;;  %633 = vst [vmem:[%s1074_s22 + $0xf0] sm:$0xff] %v601_v13  ;;  %v602_v21 = vmul.f32 %v903_v18, %v1069_v24  ;;  %v555_v22 = vpop.f32.mrb[15].mxu1 }
 0x116   : > { %615 = vst [vmem:[%s1074_s22 + $0x60] sm:$0xff] %v583_v15  ;;  %v584_v23 = vmul.f32 %v1069_v24, %v491_v20  ;;  %631 = vst [vmem:[%s1074_s22 + $0xe0] sm:$0xff] %v599_v17  ;;  %v600_v25 = vmul.f32 %v1069_v24, %v555_v22  ;;  %965 = vmaxabs.f32.vacc0 %v585_v11, %v583_v15 }
 0x117   : > { %618 = vst [vmem:[%s1074_s22 + $0x78] sm:$0xff] %v586_v19  ;;  %634 = vst [vmem:[%s1074_s22 + $0xf8] sm:$0xff] %v602_v21 }
 0x118   : > { %616 = vst [vmem:[%s1074_s22 + $0x68] sm:$0xff] %v584_v23  ;;  %632 = vst [vmem:[%s1074_s22 + $0xe8] sm:$0xff] %v600_v25  ;;  %966 = vmaxabs.f32.vacc0 %v1078_v29, %v586_v19 }
 0x11a   : > { %967 = vmaxabs.f32.vacc0 %v1082_v33, %v584_v23 }
 0x11c   : > { %968 = vmaxabs.f32.vacc0 %v1089_v37, %v1106_v45 }
 0x11e   : > { %969 = vmaxabs.f32.vacc0 %v1096_v40, %v1110_v49 }
 0x120   : > { %970 = vmaxabs.f32.vacc0 %v1117_v53, %v597_v61 }
 0x122   : > { %971 = vmaxabs.f32.vacc0 %v1124_v56, %v595_v1 }
 0x124   : > { %972 = vmaxabs.f32.vacc0 %v598_v5, %v601_v13 }
 0x126   : > { %973 = vmaxabs.f32.vacc0 %v596_v8, %v599_v17 }
 0x128   : > { %974 = vmaxabs.f32.vacc0 %v602_v21, %v600_v25 }
 0x12a   : > { %v975_v24 = vmovacc.low.even.vacc0 }
 0x12c   : > { %698 = vmax.xlane.f32.xlu0 %v975_v24 }
 0x1b9   : > { %v699_v26 = vpop.xlane.xlu0 %698 }
 0x1ba   : > { %v700_v27 = vrot.slane %v699_v26, 4 }
 0x1bc   : > { %v701_v28 = vmax.f32 %v699_v26, %v700_v27 }
 0x1be   : > { %v702_v29 = vrot.slane %v701_v28, 2 }
 0x1c0   : > { %v703_v30 = vmax.f32 %v701_v28, %v702_v29 }
 0x1c2   : > { %v704_v31 = vrot.slane %v703_v30, 1 }
 0x1c4   : > { %v705_v32 = vmax.f32 %v703_v30, %v704_v31 }
 0x1c6   : > { %920 = vpush %v705_v32 }
 0x1f7   : > { %s921_s26 = spop %920 }
 0x1f8   : > { %v707_v33 = vstv %s921_s26 }
 0x1f9   : > { %708 = vst [vmem:[%s212_s25] sm:$0xff] %v707_v33 }
 0x1fa PF: > { %s16_s17 = sadd.s32 1, %s978_s17  }
 0x1fb   : > { %p13_p5 = scmp.ge.s32.totalorder %s16_s17, 4  }
 0x1fd   :  { %15 = sbr.rel (!%p13_p5) target bundleno = 2 (0x2), region = 74 }

// kernel: _lambda_.13
= control target key start
LH: loop header
LB: loop body
LE: loop exit
PB: predicated region body
PF: predicated region fallthrough
CT: control target
= control target key end

     0   :  { %s1179_s9 = smov 1e-12   ;;  %s2074_s0 = inlined_call_operand.<no memory space> [shape: f32[1,1], index: 0, kind: input, shape index: {}]   ;;  %s2075_s1 = inlined_call_operand.vmem [shape: f32[512,128], index: 1, kind: input, shape index: {}]   ;;  %s2076_s2 = inlined_call_operand.vmem [shape: bf16[512,128], index: 2, kind: output, shape index: {}]  }
   0x1   :  { %s13_s12 = smax.f32 %s1179_s9, %s2074_s0  ;;  %v14_v2 = vld [vmem:[%s2075_s1] sm:$0xff]  ;;  %v15_v3 = vld [vmem:[%s2075_s1 + $0x8] sm:$0xff]  ;;  %v16_v4 = vld [vmem:[%s2075_s1 + $0x10] sm:$0xff] }
   0x2   :  { %v78_v0 = vstv %s13_s12  ;;  %v17_v5 = vld [vmem:[%s2075_s1 + $0x18] sm:$0xff]  ;;  %v18_v6 = vld [vmem:[%s2075_s1 + $0x20] sm:$0xff]  ;;  %v19_v7 = vld [vmem:[%s2075_s1 + $0x28] sm:$0xff] }
   0x3   :  { %1177 = vrcp.f32 %v78_v0  ;;  %v20_v8 = vld [vmem:[%s2075_s1 + $0x30] sm:$0xff]  ;;  %v21_v9 = vld [vmem:[%s2075_s1 + $0x38] sm:$0xff]  ;;  %v22_v10 = vld [vmem:[%s2075_s1 + $0x40] sm:$0xff] }
   0x4   :  { %v23_v11 = vld [vmem:[%s2075_s1 + $0x48] sm:$0xff]  ;;  %v24_v12 = vld [vmem:[%s2075_s1 + $0x50] sm:$0xff]  ;;  %v25_v13 = vld [vmem:[%s2075_s1 + $0x58] sm:$0xff] }
   0x5   :  { %v26_v14 = vld [vmem:[%s2075_s1 + $0x60] sm:$0xff]  ;;  %v27_v15 = vld [vmem:[%s2075_s1 + $0x68] sm:$0xff]  ;;  %v28_v16 = vld [vmem:[%s2075_s1 + $0x70] sm:$0xff] }
   0x6   :  { %v29_v17 = vld [vmem:[%s2075_s1 + $0x78] sm:$0xff]  ;;  %v30_v18 = vld [vmem:[%s2075_s1 + $0x80] sm:$0xff]  ;;  %v31_v19 = vld [vmem:[%s2075_s1 + $0x88] sm:$0xff] }
   0x7   :  { %v32_v20 = vld [vmem:[%s2075_s1 + $0x90] sm:$0xff]  ;;  %v33_v21 = vld [vmem:[%s2075_s1 + $0x98] sm:$0xff]  ;;  %v34_v23 = vld [vmem:[%s2075_s1 + $0xa0] sm:$0xff] }
   0x8   :  { %v35_v24 = vld [vmem:[%s2075_s1 + $0xa8] sm:$0xff]  ;;  %v36_v25 = vld [vmem:[%s2075_s1 + $0xb0] sm:$0xff]  ;;  %v37_v26 = vld [vmem:[%s2075_s1 + $0xb8] sm:$0xff] }
   0x9   :  { %v38_v31 = vld [vmem:[%s2075_s1 + $0xc0] sm:$0xff]  ;;  %v39_v32 = vld [vmem:[%s2075_s1 + $0xc8] sm:$0xff]  ;;  %v40_v33 = vld [vmem:[%s2075_s1 + $0xd0] sm:$0xff] }
   0xa   :  { %v41_v34 = vld [vmem:[%s2075_s1 + $0xd8] sm:$0xff]  ;;  %v42_v39 = vld [vmem:[%s2075_s1 + $0xe0] sm:$0xff]  ;;  %v43_v40 = vld [vmem:[%s2075_s1 + $0xe8] sm:$0xff] }
   0xb   :  { %v44_v41 = vld [vmem:[%s2075_s1 + $0xf0] sm:$0xff]  ;;  %v45_v42 = vld [vmem:[%s2075_s1 + $0xf8] sm:$0xff]  ;;  %v46_v47 = vld [vmem:[%s2075_s1 + $0x100] sm:$0xff] }
   0xc   :  { %v47_v48 = vld [vmem:[%s2075_s1 + $0x108] sm:$0xff]  ;;  %v48_v49 = vld [vmem:[%s2075_s1 + $0x110] sm:$0xff]  ;;  %v49_v50 = vld [vmem:[%s2075_s1 + $0x118] sm:$0xff] }
   0xd   :  { %v1178_v1 = vpop.eup %1177  ;;  %v50_v55 = vld [vmem:[%s2075_s1 + $0x120] sm:$0xff]  ;;  %v51_v56 = vld [vmem:[%s2075_s1 + $0x128] sm:$0xff]  ;;  %v52_v57 = vld [vmem:[%s2075_s1 + $0x130] sm:$0xff] }
   0xe   :  { %1110 = vpush %v1178_v1  ;;  %v53_v58 = vld [vmem:[%s2075_s1 + $0x138] sm:$0xff]  ;;  %v54_v63 = vld [vmem:[%s2075_s1 + $0x140] sm:$0xff]  ;;  %v55_v0 = vld [vmem:[%s2075_s1 + $0x148] sm:$0xff] }
   0xf   :  { %v56_v1 = vld [vmem:[%s2075_s1 + $0x150] sm:$0xff] }
  0x3f   :  { %s1111_s28 = spop %1110 }
  0x40   :  { %s81_s9 = smul.f32 255.0, %s1111_s28 }
  0x42   :  { %v1258_v22 = vstv %s81_s9 }
  0x43   :  { %v1273_v27 = vmul.f32 %v1258_v22, %v14_v2  ;;  %v1276_v28 = vmul.f32 %v1258_v22, %v15_v3  ;;  %v1279_v29 = vmul.f32 %v1258_v22, %v16_v4  ;;  %v1282_v30 = vmul.f32 %v1258_v22, %v17_v5 }
  0x44   :  { %v1297_v35 = vmul.f32 %v1258_v22, %v18_v6  ;;  %v1300_v36 = vmul.f32 %v1258_v22, %v19_v7  ;;  %v1303_v37 = vmul.f32 %v1258_v22, %v20_v8  ;;  %v1306_v38 = vmul.f32 %v1258_v22, %v21_v9  ;;  %v57_v6 = vld [vmem:[%s2075_s1 + $0x158] sm:$0xff]  ;;  %v58_v7 = vld [vmem:[%s2075_s1 + $0x160] sm:$0xff]  ;;  %v59_v8 = vld [vmem:[%s2075_s1 + $0x168] sm:$0xff] }
  0x45   :  { %v1321_v43 = vmul.f32 %v1258_v22, %v22_v10  ;;  %v1324_v44 = vmul.f32 %v1258_v22, %v23_v11  ;;  %v1327_v45 = vmul.f32 %v1258_v22, %v24_v12  ;;  %v1330_v46 = vmul.f32 %v1258_v22, %v25_v13  ;;  %v60_v13 = vld [vmem:[%s2075_s1 + $0x170] sm:$0xff] }
  0x46   :  { %v1345_v51 = vmul.f32 %v1258_v22, %v26_v14  ;;  %v1348_v52 = vmul.f32 %v1258_v22, %v27_v15  ;;  %v1351_v53 = vmul.f32 %v1258_v22, %v28_v16  ;;  %v1354_v54 = vmul.f32 %v1258_v22, %v29_v17  ;;  %v61_v14 = vld [vmem:[%s2075_s1 + $0x178] sm:$0xff]  ;;  %v62_v15 = vld [vmem:[%s2075_s1 + $0x180] sm:$0xff] }
  0x47   :  { %v1369_v59 = vmul.f32 %v1258_v22, %v30_v18  ;;  %v1372_v60 = vmul.f32 %v1258_v22, %v31_v19  ;;  %v1375_v61 = vmul.f32 %v1258_v22, %v32_v20  ;;  %v1378_v62 = vmul.f32 %v1258_v22, %v33_v21  ;;  %v63_v20 = vld [vmem:[%s2075_s1 + $0x188] sm:$0xff]  ;;  %v64_v21 = vld [vmem:[%s2075_s1 + $0x190] sm:$0xff] }
  0x48   :  { %v1390_v2 = vmul.f32 %v1258_v22, %v34_v23  ;;  %v1393_v3 = vmul.f32 %v1258_v22, %v35_v24  ;;  %v1396_v4 = vmul.f32 %v1258_v22, %v36_v25  ;;  %v1399_v5 = vmul.f32 %v1258_v22, %v37_v26  ;;  %v65_v23 = vld [vmem:[%s2075_s1 + $0x198] sm:$0xff] }
  0x49   :  { %v1411_v9 = vmul.f32 %v1258_v22, %v38_v31  ;;  %v1414_v10 = vmul.f32 %v1258_v22, %v39_v32  ;;  %v1417_v11 = vmul.f32 %v1258_v22, %v40_v33  ;;  %v1420_v12 = vmul.f32 %v1258_v22, %v41_v34  ;;  %v66_v32 = vld [vmem:[%s2075_s1 + $0x1a0] sm:$0xff]  ;;  %v67_v33 = vld [vmem:[%s2075_s1 + $0x1a8] sm:$0xff]  ;;  %v68_v34 = vld [vmem:[%s2075_s1 + $0x1b0] sm:$0xff] }
  0x4a   :  { %v1432_v16 = vmul.f32 %v1258_v22, %v42_v39  ;;  %v1435_v17 = vmul.f32 %v1258_v22, %v43_v40  ;;  %v1438_v18 = vmul.f32 %v1258_v22, %v44_v41  ;;  %v1441_v19 = vmul.f32 %v1258_v22, %v45_v42 }
  0x4b   :  { %v1453_v24 = vmul.f32 %v1258_v22, %v46_v47  ;;  %v1456_v25 = vmul.f32 %v1258_v22, %v47_v48  ;;  %v1459_v26 = vmul.f32 %v1258_v22, %v48_v49  ;;  %v1462_v31 = vmul.f32 %v1258_v22, %v49_v50  ;;  %v69_v47 = vld [vmem:[%s2075_s1 + $0x1b8] sm:$0xff]  ;;  %v70_v48 = vld [vmem:[%s2075_s1 + $0x1c0] sm:$0xff]  ;;  %v71_v49 = vld [vmem:[%s2075_s1 + $0x1c8] sm:$0xff] }
  0x4c   :  { %2103 = vst [vmem:[#allocation3_spill] sm:$0xff] %v1438_v18  ;;  %2104 = vst [vmem:[#allocation4_spill] sm:$0xff] %v1441_v19  ;;  %v1474_v39 = vmul.f32 %v1258_v22, %v50_v55  ;;  %v1477_v40 = vmul.f32 %v1258_v22, %v51_v56  ;;  %v1480_v41 = vmul.f32 %v1258_v22, %v52_v57 }
  0x4d   :  { %2105 = vst [vmem:[#allocation5_spill] sm:$0xff] %v1453_v24  ;;  %2106 = vst [vmem:[#allocation6_spill] sm:$0xff] %v1456_v25  ;;  %v1483_v42 = vmul.f32 %v1258_v22, %v53_v58  ;;  %v1495_v50 = vmul.f32 %v1258_v22, %v54_v63  ;;  %v1498_v55 = vmul.f32 %v1258_v22, %v55_v0  ;;  %v72_v58 = vld [vmem:[%s2075_s1 + $0x1d0] sm:$0xff]  ;;  %v74_v63 = vld [vmem:[%s2075_s1 + $0x1e0] sm:$0xff] }
  0x4e   :  { %2107 = vst [vmem:[#allocation7_spill] sm:$0xff] %v1459_v26  ;;  %2108 = vst [vmem:[#allocation8_spill] sm:$0xff] %v1462_v31  ;;  %v1501_v56 = vmul.f32 %v1258_v22, %v56_v1  ;;  %v1504_v57 = vmul.f32 %v1258_v22, %v57_v6  ;;  %v1516_v0 = vmul.f32 %v1258_v22, %v58_v7  ;;  %v77_v7 = vld [vmem:[%s2075_s1 + $0x1f8] sm:$0xff] }
  0x4f   :  { %2109 = vst [vmem:[#allocation9_spill] sm:$0xff] %v1474_v39  ;;  %2110 = vst [vmem:[#allocation10_spill] sm:$0xff] %v1483_v42  ;;  %v73_v42 = vld [vmem:[%s2075_s1 + $0x1d8] sm:$0xff]  ;;  %v1519_v1 = vmul.f32 %v1258_v22, %v59_v8  ;;  %v1522_v6 = vmul.f32 %v1258_v22, %v60_v13  ;;  %v1537_v8 = vmul.f32 %v1258_v22, %v62_v15 }
  0x50   :  { %2111 = vst [vmem:[#allocation11_spill] sm:$0xff] %v1498_v55  ;;  %2112 = vst [vmem:[#allocation12_spill] sm:$0xff] %v1501_v56  ;;  %v75_v56 = vld [vmem:[%s2075_s1 + $0x1e8] sm:$0xff]  ;;  %v76_v55 = vld [vmem:[%s2075_s1 + $0x1f0] sm:$0xff]  ;;  %v1540_v13 = vmul.f32 %v1258_v22, %v63_v20  ;;  %v1558_v15 = vmul.f32 %v1258_v22, %v69_v47  ;;  %v1561_v20 = vmul.f32 %v1258_v22, %v70_v48 }
  0x51   :  { %2113 = vst [vmem:[#allocation13_spill] sm:$0xff] %v1504_v57  ;;  %2114 = vst [vmem:[#allocation14_spill] sm:$0xff] %v1516_v0  ;;  %v1525_v57 = vmul.f32 %v1258_v22, %v61_v14  ;;  %v1543_v14 = vmul.f32 %v1258_v22, %v64_v21  ;;  %v1555_v0 = vmul.f32 %v1258_v22, %v68_v34 }
  0x52   :  { %2115 = vst [vmem:[#allocation15_spill] sm:$0xff] %v1519_v1  ;;  %2116 = vst [vmem:[#allocation16_spill] sm:$0xff] %v1522_v6  ;;  %v1549_v6 = vmul.f32 %v1258_v22, %v66_v32  ;;  %v1552_v1 = vmul.f32 %v1258_v22, %v67_v33  ;;  %v1564_v21 = vmul.f32 %v1258_v22, %v71_v49 }
  0x53   :  { %2117 = vst [vmem:[#allocation17_spill] sm:$0xff] %v1525_v57  ;;  %2118 = vst [vmem:[#allocation18_spill] sm:$0xff] %v1540_v13  ;;  %v1546_v57 = vmul.f32 %v1258_v22, %v65_v23  ;;  %v1567_v23 = vmul.f32 %v1258_v22, %v72_v58  ;;  %v1570_v32 = vmul.f32 %v1258_v22, %v73_v42  ;;  %v2175_v42 = vld [vmem:[#allocation3_spill] sm:$0xff] }
  0x54   :  { %2120 = vst [vmem:[#allocation20_spill] sm:$0xff] %v1555_v0  ;;  %v1573_v33 = vmul.f32 %v1258_v22, %v74_v63  ;;  %v1576_v34 = vmul.f32 %v1258_v22, %v75_v56  ;;  %v1579_v47 = vmul.f32 %v1258_v22, %v76_v55  ;;  %v1582_v48 = vmul.f32 %v1258_v22, %v77_v7 }
  0x55   :  { %2119 = vst [vmem:[#allocation19_spill] sm:$0xff] %v1546_v57  ;;  %2121 = vst [vmem:[#allocation21_spill] sm:$0xff] %v1567_v23  ;;  %v2132_v39 = vmov %v1567_v23  ;;  %v2135_v63 = vround.rtne.f32 %v1273_v27  ;;  %v2137_v56 = vround.rtne.f32 %v1276_v28  ;;  %v2141_v7 = vround.rtne.f32 %v1282_v30 }
  0x56   :  { %2122 = vst [vmem:[#allocation22_spill] sm:$0xff] %v1573_v33  ;;  %2123 = vst [vmem:[#allocation23_spill] sm:$0xff] %v1579_v47  ;;  %v2124_v49 = vld [vmem:[#allocation10_spill] sm:$0xff]  ;;  %v2133_v13 = vmov %v1573_v33  ;;  %v2134_v57 = vmov %v1579_v47  ;;  %v2139_v47 = vround.rtne.f32 %v1279_v29  ;;  %v2143_v23 = vround.rtne.f32 %v1297_v35 }
  0x57   :  { %v2125_v18 = vld [vmem:[#allocation11_spill] sm:$0xff]  ;;  %v2126_v19 = vld [vmem:[#allocation12_spill] sm:$0xff]  ;;  %v1650_v0 = vclamps-f32 %v2135_v63, 255.0  ;;  %v1654_v33 = vclamps-f32 %v2137_v56, 255.0  ;;  %v1662_v22 = vclamps-f32 %v2141_v7, 255.0  ;;  %v2145_v27 = vround.rtne.f32 %v1300_v36 }
  0x58   :  { %v2127_v24 = vld [vmem:[#allocation13_spill] sm:$0xff]  ;;  %v2128_v25 = vld [vmem:[#allocation14_spill] sm:$0xff]  ;;  %v1658_v55 = vclamps-f32 %v2139_v47, 255.0  ;;  %v1666_v58 = vclamps-f32 %v2143_v23, 255.0  ;;  %v2146_v28 = vround.rtne.f32 %v1303_v37  ;;  %v2147_v29 = vround.rtne.f32 %v1306_v38 }
  0x59   :  { %v2129_v26 = vld [vmem:[#allocation15_spill] sm:$0xff]  ;;  %v2130_v31 = vld [vmem:[#allocation16_spill] sm:$0xff]  ;;  %2136 = vst [vmem:[#allocation10_spill] sm:$0xff] %v1650_v0  ;;  %2138 = vst [vmem:[#allocation11_spill] sm:$0xff] %v1654_v33  ;;  %v1670_v63 = vclamps-f32 %v2145_v27, 255.0  ;;  %v2148_v30 = vround.rtne.f32 %v1321_v43  ;;  %v2149_v35 = vround.rtne.f32 %v1324_v44  ;;  %v2150_v36 = vround.rtne.f32 %v1327_v45 }
  0x5a   :  { %2140 = vst [vmem:[#allocation12_spill] sm:$0xff] %v1658_v55  ;;  %2142 = vst [vmem:[#allocation13_spill] sm:$0xff] %v1662_v22  ;;  %v1674_v56 = vclamps-f32 %v2146_v28, 255.0  ;;  %v1678_v47 = vclamps-f32 %v2147_v29, 255.0  ;;  %v2151_v37 = vround.rtne.f32 %v1330_v46  ;;  %v2152_v38 = vround.rtne.f32 %v1345_v51 }
  0x5b   :  { %2144 = vst [vmem:[#allocation14_spill] sm:$0xff] %v1666_v58  ;;  %v1682_v7 = vclamps-f32 %v2148_v30, 255.0  ;;  %v1686_v23 = vclamps-f32 %v2149_v35, 255.0  ;;  %v1690_v27 = vclamps-f32 %v2150_v36, 255.0  ;;  %v2153_v43 = vround.rtne.f32 %v1348_v52 }
  0x5c   :  { %v1694_v28 = vclamps-f32 %v2151_v37, 255.0  ;;  %v1698_v29 = vclamps-f32 %v2152_v38, 255.0  ;;  %v2154_v44 = vround.rtne.f32 %v1351_v53  ;;  %v2155_v45 = vround.rtne.f32 %v1354_v54 }
  0x5d   :  { %v1702_v30 = vclamps-f32 %v2153_v43, 255.0  ;;  %v2156_v46 = vround.rtne.f32 %v1369_v59  ;;  %v2157_v51 = vround.rtne.f32 %v1372_v60  ;;  %v2158_v52 = vround.rtne.f32 %v1375_v61 }
  0x5e   :  { %v1706_v35 = vclamps-f32 %v2154_v44, 255.0  ;;  %v1710_v36 = vclamps-f32 %v2155_v45, 255.0  ;;  %v2159_v53 = vround.rtne.f32 %v1378_v62  ;;  %v2160_v54 = vround.rtne.f32 %v1390_v2 }
  0x5f   :  { %v1714_v37 = vclamps-f32 %v2156_v46, 255.0  ;;  %v1718_v38 = vclamps-f32 %v2157_v51, 255.0  ;;  %v1722_v43 = vclamps-f32 %v2158_v52, 255.0  ;;  %v2161_v59 = vround.rtne.f32 %v1393_v3 }
  0x60   :  { %v1726_v44 = vclamps-f32 %v2159_v53, 255.0  ;;  %v1730_v45 = vclamps-f32 %v2160_v54, 255.0  ;;  %v2162_v60 = vround.rtne.f32 %v1396_v4  ;;  %v2163_v61 = vround.rtne.f32 %v1399_v5 }
  0x61   :  { %v1734_v46 = vclamps-f32 %v2161_v59, 255.0  ;;  %v2164_v62 = vround.rtne.f32 %v1411_v9  ;;  %v2165_v2 = vround.rtne.f32 %v1414_v10  ;;  %v2167_v3 = vround.rtne.f32 %v1417_v11 }
  0x62   :  { %v1738_v51 = vclamps-f32 %v2162_v60, 255.0  ;;  %v1742_v52 = vclamps-f32 %v2163_v61, 255.0  ;;  %v2169_v4 = vround.rtne.f32 %v1420_v12  ;;  %v2171_v5 = vround.rtne.f32 %v1432_v16 }
  0x63   :  { %v1746_v53 = vclamps-f32 %v2164_v62, 255.0  ;;  %v1750_v54 = vclamps-f32 %v2165_v2, 255.0  ;;  %v1754_v59 = vclamps-f32 %v2167_v3, 255.0  ;;  %v2173_v9 = vround.rtne.f32 %v1435_v17 }
  0x64   :  { %v1758_v60 = vclamps-f32 %v2169_v4, 255.0  ;;  %v1762_v61 = vclamps-f32 %v2171_v5, 255.0  ;;  %v2176_v10 = vround.rtne.f32 %v2175_v42 }
  0x65   :  { %2166 = vst [vmem:[#allocation15_spill] sm:$0xff] %v1750_v54  ;;  %2168 = vst [vmem:[#allocation16_spill] sm:$0xff] %v1754_v59  ;;  %v1766_v62 = vclamps-f32 %v2173_v9, 255.0  ;;  %v2178_v54 = vld [vmem:[#allocation4_spill] sm:$0xff]  ;;  %v2180_v59 = vld [vmem:[#allocation5_spill] sm:$0xff] }
  0x66   :  { %2170 = vst [vmem:[#allocation21_spill] sm:$0xff] %v1758_v60  ;;  %2172 = vst [vmem:[#allocation22_spill] sm:$0xff] %v1762_v61  ;;  %v1770_v2 = vclamps-f32 %v2176_v10, 255.0  ;;  %v2179_v11 = vround.rtne.f32 %v2178_v54  ;;  %v2181_v12 = vround.rtne.f32 %v2180_v59  ;;  %v2182_v60 = vld [vmem:[#allocation6_spill] sm:$0xff]  ;;  %v2184_v61 = vld [vmem:[#allocation7_spill] sm:$0xff]  ;;  %v2190_v59 = vround.rtne.f32 %v1477_v40 }
  0x67   :  { %2174 = vst [vmem:[#allocation23_spill] sm:$0xff] %v1766_v62  ;;  %v2183_v16 = vround.rtne.f32 %v2182_v60  ;;  %v2185_v17 = vround.rtne.f32 %v2184_v61  ;;  %v2186_v62 = vld [vmem:[#allocation8_spill] sm:$0xff]  ;;  %v2191_v60 = vround.rtne.f32 %v1480_v41  ;;  %v2192_v61 = vround.rtne.f32 %v2124_v49 }
  0x68   :  { %2177 = vst [vmem:[#allocation3_spill] sm:$0xff] %v1770_v2  ;;  %v1774_v3 = vclamps-f32 %v2179_v11, 255.0  ;;  %v1778_v4 = vclamps-f32 %v2181_v12, 255.0  ;;  %v2187_v42 = vround.rtne.f32 %v2186_v62  ;;  %v2188_v2 = vld [vmem:[#allocation9_spill] sm:$0xff]  ;;  %v1798_v12 = vclamps-f32 %v2190_v59, 255.0 }
  0x69   :  { %v1782_v5 = vclamps-f32 %v2183_v16, 255.0  ;;  %v1786_v9 = vclamps-f32 %v2185_v17, 255.0  ;;  %v2189_v54 = vround.rtne.f32 %v2188_v2  ;;  %v1802_v16 = vclamps-f32 %v2191_v60, 255.0 }
  0x6a   :  { %v1790_v10 = vclamps-f32 %v2187_v42, 255.0  ;;  %v1806_v17 = vclamps-f32 %v2192_v61, 255.0  ;;  %v2193_v62 = vround.rtne.f32 %v1495_v50  ;;  %v2194_v2 = vround.rtne.f32 %v2125_v18 }
  0x6b   :  { %v1794_v11 = vclamps-f32 %v2189_v54, 255.0  ;;  %v2196_v40 = vround.rtne.f32 %v2126_v19  ;;  %v2197_v41 = vround.rtne.f32 %v2127_v24  ;;  %v2199_v49 = vround.rtne.f32 %v2128_v25 }
  0x6c   :  { %v1810_v42 = vclamps-f32 %v2193_v62, 255.0  ;;  %v1814_v54 = vclamps-f32 %v2194_v2, 255.0  ;;  %v2200_v50 = vround.rtne.f32 %v2129_v26  ;;  %v2202_v18 = vround.rtne.f32 %v2130_v31  ;;  %v2230_v58 = vld [vmem:[#allocation15_spill] sm:$0xff]  ;;  %v2231_v22 = vld [vmem:[#allocation16_spill] sm:$0xff] }
  0x6d   :  { %v1818_v59 = vclamps-f32 %v2196_v40, 255.0  ;;  %v1822_v60 = vclamps-f32 %v2197_v41, 255.0  ;;  %v1826_v61 = vclamps-f32 %v2199_v49, 255.0  ;;  %v2205_v24 = vround.rtne.f32 %v1537_v8  ;;  %v2232_v55 = vld [vmem:[#allocation21_spill] sm:$0xff]  ;;  %v2233_v33 = vld [vmem:[#allocation22_spill] sm:$0xff] }
  0x6e   :  { %2195 = vst [vmem:[#allocation4_spill] sm:$0xff] %v1814_v54  ;;  %v1830_v62 = vclamps-f32 %v2200_v50, 255.0  ;;  %v1834_v2 = vclamps-f32 %v2202_v18, 255.0  ;;  %v2203_v54 = vld [vmem:[#allocation17_spill] sm:$0xff]  ;;  %v2209_v26 = vround.rtne.f32 %v1543_v14  ;;  %v2213_v8 = vround.rtne.f32 %v1552_v1  ;;  %v2234_v0 = vld [vmem:[#allocation23_spill] sm:$0xff] }
  0x6f   :  { %2198 = vst [vmem:[#allocation5_spill] sm:$0xff] %v1822_v60  ;;  %v2204_v19 = vround.rtne.f32 %v2203_v54  ;;  %v1842_v41 = vclamps-f32 %v2205_v24, 255.0  ;;  %v2207_v60 = vld [vmem:[#allocation18_spill] sm:$0xff]  ;;  %v2212_v54 = vround.rtne.f32 %v1549_v6  ;;  %v2216_v14 = vround.rtne.f32 %v1558_v15 }
  0x70   :  { %2201 = vst [vmem:[#allocation6_spill] sm:$0xff] %v1830_v62  ;;  %v2208_v25 = vround.rtne.f32 %v2207_v60  ;;  %v1850_v50 = vclamps-f32 %v2209_v26, 255.0  ;;  %v2210_v62 = vld [vmem:[#allocation19_spill] sm:$0xff]  ;;  %v1862_v24 = vclamps-f32 %v2213_v8, 255.0  ;;  %v2218_v6 = vround.rtne.f32 %v1564_v21 }
  0x71   :  { %v1838_v40 = vclamps-f32 %v2204_v19, 255.0  ;;  %2206 = vst [vmem:[#allocation7_spill] sm:$0xff] %v1842_v41  ;;  %v2211_v31 = vround.rtne.f32 %v2210_v62  ;;  %v1858_v19 = vclamps-f32 %v2212_v54, 255.0  ;;  %v2214_v41 = vld [vmem:[#allocation20_spill] sm:$0xff]  ;;  %v1870_v26 = vclamps-f32 %v2216_v14, 255.0 }
  0x72   :  { %v1846_v49 = vclamps-f32 %v2208_v25, 255.0  ;;  %v2215_v60 = vround.rtne.f32 %v2214_v41  ;;  %v2217_v62 = vround.rtne.f32 %v1561_v20  ;;  %v1878_v54 = vclamps-f32 %v2218_v6, 255.0 }
  0x73   :  { %v1854_v18 = vclamps-f32 %v2211_v31, 255.0  ;;  %v2219_v1 = vround.rtne.f32 %v2132_v39  ;;  %v2220_v41 = vround.rtne.f32 %v1570_v32  ;;  %v2222_v15 = vround.rtne.f32 %v2133_v13 }
  0x74   :  { %v1866_v25 = vclamps-f32 %v2215_v60, 255.0  ;;  %v1874_v31 = vclamps-f32 %v2217_v62, 255.0  ;;  %v2224_v20 = vround.rtne.f32 %v1576_v34  ;;  %v2226_v21 = vround.rtne.f32 %v2134_v57 }
  0x75   :  { %v1882_v8 = vclamps-f32 %v2219_v1, 255.0  ;;  %v1886_v60 = vclamps-f32 %v2220_v41, 255.0  ;;  %v1890_v14 = vclamps-f32 %v2222_v15, 255.0  ;;  %v2228_v39 = vround.rtne.f32 %v1582_v48 }
  0x76   :  { %v1894_v62 = vclamps-f32 %v2224_v20, 255.0  ;;  %v1898_v6 = vclamps-f32 %v2226_v21, 255.0  ;;  %v344_v20 = vmax.f32 %v1670_v63, 0.0  ;;  %v345_v57 = vmax.f32 %v1674_v56, 0.0 }
  0x77   :  { %2221 = vst [vmem:[#allocation8_spill] sm:$0xff] %v1886_v60  ;;  %2223 = vst [vmem:[#allocation9_spill] sm:$0xff] %v1890_v14  ;;  %v1902_v1 = vclamps-f32 %v2228_v39, 255.0  ;;  %v346_v21 = vmax.f32 %v1678_v47, 0.0  ;;  %v347_v48 = vmax.f32 %v1682_v7, 0.0  ;;  %v348_v39 = vmax.f32 %v1686_v23, 0.0 }
  0x78   :  { %2225 = vst [vmem:[#allocation17_spill] sm:$0xff] %v1894_v62  ;;  %2227 = vst [vmem:[#allocation18_spill] sm:$0xff] %v1898_v6  ;;  %v349_v32 = vmax.f32 %v1690_v27, 0.0  ;;  %v350_v41 = vmax.f32 %v1694_v28, 0.0  ;;  %v351_v13 = vmax.f32 %v1698_v29, 0.0  ;;  %v352_v15 = vmax.f32 %v1702_v30, 0.0 }
  0x79   :  { %2229 = vst [vmem:[#allocation19_spill] sm:$0xff] %v1902_v1  ;;  %v353_v34 = vmax.f32 %v1706_v35, 0.0  ;;  %v354_v63 = vmax.f32 %v1710_v36, 0.0  ;;  %v355_v56 = vmax.f32 %v1714_v37, 0.0  ;;  %v356_v47 = vmax.f32 %v1718_v38, 0.0  ;;  %v2235_v1 = vld [vmem:[#allocation3_spill] sm:$0xff] }
  0x7a   :  { %v357_v7 = vmax.f32 %v1722_v43, 0.0  ;;  %v358_v23 = vmax.f32 %v1726_v44, 0.0  ;;  %v359_v27 = vmax.f32 %v1730_v45, 0.0  ;;  %v360_v28 = vmax.f32 %v1734_v46, 0.0  ;;  %v2236_v6 = vld [vmem:[#allocation4_spill] sm:$0xff]  ;;  %v2237_v62 = vld [vmem:[#allocation5_spill] sm:$0xff] }
  0x7b   :  { %v361_v29 = vmax.f32 %v1738_v51, 0.0  ;;  %v362_v30 = vmax.f32 %v1742_v52, 0.0  ;;  %v363_v35 = vmax.f32 %v1746_v53, 0.0  ;;  %v364_v36 = vmax.f32 %v2230_v58, 0.0  ;;  %v2238_v14 = vld [vmem:[#allocation6_spill] sm:$0xff]  ;;  %v2239_v60 = vld [vmem:[#allocation7_spill] sm:$0xff] }
  0x7c   :  { %v365_v37 = vmax.f32 %v2231_v22, 0.0  ;;  %v366_v38 = vmax.f32 %v2232_v55, 0.0  ;;  %v367_v43 = vmax.f32 %v2233_v33, 0.0  ;;  %v368_v44 = vmax.f32 %v2234_v0, 0.0 }
  0x7d   :  { %v369_v45 = vmax.f32 %v2235_v1, 0.0  ;;  %v370_v46 = vmax.f32 %v1774_v3, 0.0  ;;  %v371_v51 = vmax.f32 %v1778_v4, 0.0  ;;  %v372_v52 = vmax.f32 %v1782_v5, 0.0 }
  0x7e   :  { %v373_v53 = vmax.f32 %v1786_v9, 0.0  ;;  %v374_v58 = vmax.f32 %v1790_v10, 0.0  ;;  %v375_v22 = vmax.f32 %v1794_v11, 0.0  ;;  %v376_v55 = vmax.f32 %v1798_v12, 0.0 }
  0x7f   :  { %v377_v33 = vmax.f32 %v1802_v16, 0.0  ;;  %v378_v0 = vmax.f32 %v1806_v17, 0.0  ;;  %v379_v1 = vmax.f32 %v1810_v42, 0.0  ;;  %v380_v3 = vmax.f32 %v2236_v6, 0.0 }
  0x80   :  { %v381_v4 = vmax.f32 %v1818_v59, 0.0  ;;  %v382_v5 = vmax.f32 %v2237_v62, 0.0  ;;  %v383_v9 = vmax.f32 %v1826_v61, 0.0  ;;  %v384_v10 = vmax.f32 %v2238_v14, 0.0 }
  0x81   :  { %v385_v11 = vmax.f32 %v1834_v2, 0.0  ;;  %v386_v12 = vmax.f32 %v1838_v40, 0.0  ;;  %v387_v16 = vmax.f32 %v2239_v60, 0.0  ;;  %v388_v17 = vmax.f32 %v1846_v49, 0.0  ;;  %v2240_v49 = vld [vmem:[#allocation8_spill] sm:$0xff] }
  0x82   :  { %v389_v42 = vmax.f32 %v1850_v50, 0.0  ;;  %v390_v6 = vmax.f32 %v1854_v18, 0.0  ;;  %v391_v59 = vmax.f32 %v1858_v19, 0.0  ;;  %v392_v62 = vmax.f32 %v1862_v24, 0.0  ;;  %v2241_v18 = vld [vmem:[#allocation9_spill] sm:$0xff] }
  0x83   :  { %v393_v61 = vmax.f32 %v1866_v25, 0.0  ;;  %v394_v14 = vmax.f32 %v1870_v26, 0.0  ;;  %v395_v2 = vmax.f32 %v1874_v31, 0.0  ;;  %v396_v40 = vmax.f32 %v1878_v54, 0.0  ;;  %v2242_v24 = vld [vmem:[#allocation17_spill] sm:$0xff]  ;;  %v2243_v26 = vld [vmem:[#allocation18_spill] sm:$0xff] }
  0x84   :  { %v397_v60 = vmax.f32 %v1882_v8, 0.0  ;;  %v398_v50 = vmax.f32 %v2240_v49, 0.0  ;;  %v399_v19 = vmax.f32 %v2241_v18, 0.0  ;;  %v400_v25 = vmax.f32 %v2242_v24, 0.0  ;;  %v2244_v54 = vld [vmem:[#allocation19_spill] sm:$0xff]  ;;  %v2245_v49 = vld [vmem:[#allocation10_spill] sm:$0xff] }
  0x85   :  { %v401_v31 = vmax.f32 %v2243_v26, 0.0  ;;  %v402_v8 = vmax.f32 %v2244_v54, 0.0  ;;  %v2246_v18 = vmax.f32 %v2245_v49, 0.0  ;;  %v2247_v24 = vld [vmem:[#allocation11_spill] sm:$0xff]  ;;  %v2249_v49 = vld [vmem:[#allocation12_spill] sm:$0xff] }
  0x86   :  { %v2248_v26 = vmax.f32 %v2247_v24, 0.0  ;;  %v2250_v24 = vmax.f32 %v2249_v49, 0.0 }
  0x88   :  { %v922_v54 = vpack.c.bf16 %v2248_v26, %v2246_v18  ;;  %v2251_v18 = vld [vmem:[#allocation13_spill] sm:$0xff] }
  0x89   :  { %v2252_v26 = vmax.f32 %v2251_v18, 0.0  ;;  %v2253_v18 = vld [vmem:[#allocation14_spill] sm:$0xff] }
  0x8a   :  { %923 = vst [vmem:[%s2076_s2] sm:$0xff] %v922_v54  }
  0x8b   :  { %v927_v49 = vpack.c.bf16 %v2252_v26, %v2250_v24  ;;  %v2254_v24 = vmax.f32 %v2253_v18, 0.0  ;;  %v937_v18 = vpack.c.bf16 %v346_v21, %v345_v57  ;;  %v952_v21 = vpack.c.bf16 %v352_v15, %v351_v13 }
  0x8c   :  { %v957_v57 = vpack.c.bf16 %v354_v63, %v353_v34  ;;  %v977_v13 = vpack.c.bf16 %v362_v30, %v361_v29  ;;  %v982_v15 = vpack.c.bf16 %v364_v36, %v363_v35  ;;  %v987_v34 = vpack.c.bf16 %v366_v38, %v365_v37 }
  0x8d   :  { %v932_v26 = vpack.c.bf16 %v344_v20, %v2254_v24  ;;  %v942_v20 = vpack.c.bf16 %v348_v39, %v347_v48  ;;  %v947_v24 = vpack.c.bf16 %v350_v41, %v349_v32  ;;  %1079 = vst [vmem:[%s2076_s2 + $0x8] sm:$0xff] %v927_v49   ;;  %1081 = vst [vmem:[%s2076_s2 + $0x18] sm:$0xff] %v937_v18  }
  0x8e   :  { %v962_v48 = vpack.c.bf16 %v356_v47, %v355_v56  ;;  %v967_v32 = vpack.c.bf16 %v358_v23, %v357_v7  ;;  %v972_v41 = vpack.c.bf16 %v360_v28, %v359_v27  ;;  %1084 = vst [vmem:[%s2076_s2 + $0x30] sm:$0xff] %v952_v21   ;;  %1085 = vst [vmem:[%s2076_s2 + $0x38] sm:$0xff] %v957_v57  }
  0x8f   :  { %1080 = vst [vmem:[%s2076_s2 + $0x10] sm:$0xff] %v932_v26   ;;  %1082 = vst [vmem:[%s2076_s2 + $0x20] sm:$0xff] %v942_v20   ;;  %v992_v39 = vpack.c.bf16 %v368_v44, %v367_v43  ;;  %v997_v63 = vpack.c.bf16 %v370_v46, %v369_v45  ;;  %v1002_v56 = vpack.c.bf16 %v372_v52, %v371_v51 }
  0x90   :  { %1083 = vst [vmem:[%s2076_s2 + $0x28] sm:$0xff] %v947_v24   ;;  %1086 = vst [vmem:[%s2076_s2 + $0x40] sm:$0xff] %v962_v48   ;;  %v1007_v47 = vpack.c.bf16 %v374_v58, %v373_v53  ;;  %v1012_v7 = vpack.c.bf16 %v376_v55, %v375_v22  ;;  %v1017_v23 = vpack.c.bf16 %v378_v0, %v377_v33 }
  0x91   :  { %1087 = vst [vmem:[%s2076_s2 + $0x48] sm:$0xff] %v967_v32   ;;  %1088 = vst [vmem:[%s2076_s2 + $0x50] sm:$0xff] %v972_v41   ;;  %v1022_v27 = vpack.c.bf16 %v380_v3, %v379_v1  ;;  %v1027_v28 = vpack.c.bf16 %v382_v5, %v381_v4  ;;  %v1032_v29 = vpack.c.bf16 %v384_v10, %v383_v9 }
  0x92   :  { %1089 = vst [vmem:[%s2076_s2 + $0x58] sm:$0xff] %v977_v13   ;;  %1090 = vst [vmem:[%s2076_s2 + $0x60] sm:$0xff] %v982_v15   ;;  %v1037_v30 = vpack.c.bf16 %v386_v12, %v385_v11  ;;  %v1042_v35 = vpack.c.bf16 %v388_v17, %v387_v16  ;;  %v1047_v36 = vpack.c.bf16 %v390_v6, %v389_v42 }
  0x93   :  { %1091 = vst [vmem:[%s2076_s2 + $0x68] sm:$0xff] %v987_v34   ;;  %1092 = vst [vmem:[%s2076_s2 + $0x70] sm:$0xff] %v992_v39   ;;  %v1052_v37 = vpack.c.bf16 %v392_v62, %v391_v59  ;;  %v1057_v38 = vpack.c.bf16 %v394_v14, %v393_v61  ;;  %v1062_v43 = vpack.c.bf16 %v396_v40, %v395_v2 }
  0x94   :  { %1093 = vst [vmem:[%s2076_s2 + $0x78] sm:$0xff] %v997_v63   ;;  %1094 = vst [vmem:[%s2076_s2 + $0x80] sm:$0xff] %v1002_v56   ;;  %v1067_v44 = vpack.c.bf16 %v398_v50, %v397_v60  ;;  %v1072_v45 = vpack.c.bf16 %v400_v25, %v399_v19  ;;  %v1077_v46 = vpack.c.bf16 %v402_v8, %v401_v31 }
  0x95   :  { %1095 = vst [vmem:[%s2076_s2 + $0x88] sm:$0xff] %v1007_v47   ;;  %1096 = vst [vmem:[%s2076_s2 + $0x90] sm:$0xff] %v1012_v7  }
  0x96   :  { %1097 = vst [vmem:[%s2076_s2 + $0x98] sm:$0xff] %v1017_v23   ;;  %1098 = vst [vmem:[%s2076_s2 + $0xa0] sm:$0xff] %v1022_v27  }
  0x97   :  { %1099 = vst [vmem:[%s2076_s2 + $0xa8] sm:$0xff] %v1027_v28   ;;  %1100 = vst [vmem:[%s2076_s2 + $0xb0] sm:$0xff] %v1032_v29  }
  0x98   :  { %1101 = vst [vmem:[%s2076_s2 + $0xb8] sm:$0xff] %v1037_v30   ;;  %1102 = vst [vmem:[%s2076_s2 + $0xc0] sm:$0xff] %v1042_v35  }
  0x99   :  { %1103 = vst [vmem:[%s2076_s2 + $0xc8] sm:$0xff] %v1047_v36   ;;  %1104 = vst [vmem:[%s2076_s2 + $0xd0] sm:$0xff] %v1052_v37  }
  0x9a   :  { %1105 = vst [vmem:[%s2076_s2 + $0xd8] sm:$0xff] %v1057_v38   ;;  %1106 = vst [vmem:[%s2076_s2 + $0xe0] sm:$0xff] %v1062_v43  }
  0x9b   :  { %1107 = vst [vmem:[%s2076_s2 + $0xe8] sm:$0xff] %v1067_v44   ;;  %1108 = vst [vmem:[%s2076_s2 + $0xf0] sm:$0xff] %v1072_v45  }
  0x9c   :  { %1109 = vst [vmem:[%s2076_s2 + $0xf8] sm:$0xff] %v1077_v46  }

// kernel: _lambda_.14
= control target key start
LH: loop header
LB: loop body
LE: loop exit
PB: predicated region body
PF: predicated region fallthrough
CT: control target
= control target key end

     0   :  { %s1009_s17 = smov 0   ;;  %s1180_s0 = inlined_call_operand.<no memory space> [shape: f32[1,1], index: 0, kind: input, shape index: {}]   ;;  %s1181_s1 = inlined_call_operand.vmem [shape: bf16[512,128], index: 1, kind: input, shape index: {}]   ;;  %s1182_s2 = inlined_call_operand.vmem [shape: bf16[128,128], index: 2, kind: input, shape index: {}]   ;;  %s1183_s3 = inlined_call_operand.vmem [shape: f32[512,128], index: 3, kind: output, shape index: {0}]   ;;  %s1184_s4 = inlined_call_operand.vmem [shape: f32[16,128], index: 4, kind: output, shape index: {1}]  }
   0x1   :  { %10 = sst [smem:[#allocation2]] %s1180_s0 }
   0x2 LB: > { %s1015_s18 = sadd.s32 4294967295, %s978_s17   ;;  %p800_p0 = scmp.ge.s32.totalorder %s978_s17, 1  ;;  %s978_s17 = sphi %s1009_s17, %s16_s17  }
   0x3   : > { %p167_p1 = scmp.lt.s32.totalorder %s978_s17, 3 }
   0x5   : > { %p168_p2 = pnand %p800_p0, %p167_p1 }
   0x6   : > { %v931_v0 = vld [vmem:[%s1182_s2] sm:$0xff] (!%p168_p2)   ;;  %s801_s0 = sshll.u32 (!%p168_p2), %s1015_s18, 5  ;;  %v932_v1 = vld [vmem:[%s1182_s2 + $0x8] sm:$0xff] (!%p168_p2)   ;;  %v933_v2 = vld [vmem:[%s1182_s2 + $0x10] sm:$0xff] (!%p168_p2)   ;;  %s567_s13 = sld [smem:[#allocation2]] (!%p168_p2) }
   0x7   : > { %171 = sbr.rel (%p168_p2) target bundleno = 506 (0x1fa), region = 32  ;;  %p198_p3 = scmp.lt.s32.totalorder (!%p168_p2), %s801_s0, 63  ;;  %856 = vmatprep.subr.bf16.mxu0 (!%p168_p2), %v931_v0  ;;  %904 = vmatprep.subr.bf16.mxu1 (!%p168_p2), %v931_v0  ;;  %v934_v3 = vld [vmem:[%s1182_s2 + $0x18] sm:$0xff] (!%p168_p2)   ;;  %v935_v6 = vld [vmem:[%s1182_s2 + $0x20] sm:$0xff] (!%p168_p2)   ;;  %v936_v7 = vld [vmem:[%s1182_s2 + $0x28] sm:$0xff] (!%p168_p2)  }
   0x8   : > { %857 = vmatpush3.bf16.msra.mxu0 (!%p168_p2), %v931_v0  ;;  %912 = vmatpush3.bf16.msra.mxu1 (!%p168_p2), %v931_v0  ;;  %v937_v8 = vld [vmem:[%s1182_s2 + $0x30] sm:$0xff] (!%p168_p2)   ;;  %v938_v9 = vld [vmem:[%s1182_s2 + $0x38] sm:$0xff] (!%p168_p2)   ;;  %s980_s14 = smov (!%p168_p2), 1e-12   ;;  %p209_p4 = scmp.lt.s32.totalorder (!%p168_p2), %s1015_s18, 1 }
   0x9   : > { %858 = vmatprep.subr.bf16.mxu0 (!%p168_p2), %v932_v1  ;;  %905 = vmatprep.subr.bf16.mxu1 (!%p168_p2), %v932_v1 }
   0xc   : > { %859 = vmatpush3.bf16.msra.mxu0 (!%p168_p2), %v932_v1  ;;  %913 = vmatpush3.bf16.msra.mxu1 (!%p168_p2), %v932_v1  ;;  %s568_s15 = smax.f32 (!%p168_p2), %s980_s14, %s567_s13 }
   0xd   : > { %860 = vmatprep.subr.bf16.mxu0 (!%p168_p2), %v933_v2  ;;  %906 = vmatprep.subr.bf16.mxu1 (!%p168_p2), %v933_v2  ;;  %s569_s16 = smul.f32 (!%p168_p2), 4.0850223e-06, %s568_s15 }
   0xe   : > { %s1186_s0 = smov (!%p198_p3, %s801_s0), 63  ;;  %s1188_s18 = smov (!%p209_p4, %s1015_s18), 1 }
   0xf   : > { %s802_s25 = sshll.u32 %s1186_s0, 2  ;;  %s804_s19 = sshll.u32 %s1186_s0, 3  ;;  %v1069_v24 = vstv %s569_s16 }
  0x10   : > { %s1035_s28 = scalar_lea.vmem %s1181_s1, %s802_s25  ;;  %861 = vmatpush3.bf16.msra.mxu0 %v933_v2  ;;  %914 = vmatpush3.bf16.msra.mxu1 %v933_v2  ;;  %s1074_s22 = scalar_lea.vmem %s1183_s3, %s804_s19 }
  0x11   : > { %v939_v4 = vld [vmem:[%s1035_s28] sm:$0xff]   ;;  %862 = vmatprep.subr.bf16.mxu0 %v934_v3  ;;  %907 = vmatprep.subr.bf16.mxu1 %v934_v3  ;;  %v940_v10 = vld [vmem:[%s1035_s28 + $0x8] sm:$0xff]   ;;  %v943_v12 = vld [vmem:[%s1035_s28 + $0x10] sm:$0xff]   ;;  %s805_s0 = sshll.u32 %s1188_s18, 3 }
  0x12   : > { %872 = vmatprep.mubr.bf16.mxu0 %v939_v4  ;;  %v941_v5 = vld [vmem:[%s1035_s28 + $0x40] sm:$0xff]   ;;  %v942_v11 = vld [vmem:[%s1035_s28 + $0x48] sm:$0xff]   ;;  %v945_v13 = vld [vmem:[%s1035_s28 + $0x50] sm:$0xff]   ;;  %s212_s25 = scalar_lea.vmem %s1184_s4, %s805_s0 }
  0x13   : > { %888 = vmatprep.mubr.bf16.mxu1 %v941_v5  ;;  %v944_v14 = vld [vmem:[%s1035_s28 + $0x18] sm:$0xff]   ;;  %v947_v16 = vld [vmem:[%s1035_s28 + $0x20] sm:$0xff]   ;;  %v948_v18 = vld [vmem:[%s1035_s28 + $0x28] sm:$0xff]  }
  0x14   : > { %863 = vmatpush3.bf16.msra.mxu0 %v934_v3  ;;  %915 = vmatpush3.bf16.msra.mxu1 %v934_v3  ;;  %v946_v15 = vld [vmem:[%s1035_s28 + $0x58] sm:$0xff]   ;;  %v949_v17 = vld [vmem:[%s1035_s28 + $0x60] sm:$0xff]   ;;  %v950_v19 = vld [vmem:[%s1035_s28 + $0x68] sm:$0xff]  }
  0x15   : > { %864 = vmatprep.subr.bf16.mxu0 %v935_v6  ;;  %908 = vmatprep.subr.bf16.mxu1 %v935_v6  ;;  %v951_v20 = vld [vmem:[%s1035_s28 + $0x30] sm:$0xff]   ;;  %v952_v22 = vld [vmem:[%s1035_s28 + $0x38] sm:$0xff]  }
  0x16   : > { %v953_v21 = vld [vmem:[%s1035_s28 + $0x70] sm:$0xff]   ;;  %v954_v23 = vld [vmem:[%s1035_s28 + $0x78] sm:$0xff]  }
  0x18   : > { %865 = vmatpush3.bf16.msra.mxu0 %v935_v6  ;;  %916 = vmatpush3.bf16.msra.mxu1 %v935_v6 }
  0x19   : > { %866 = vmatprep.subr.bf16.mxu0 %v936_v7  ;;  %909 = vmatprep.subr.bf16.mxu1 %v936_v7 }
  0x1c   : > { %867 = vmatpush3.bf16.msra.mxu0 %v936_v7  ;;  %917 = vmatpush3.bf16.msra.mxu1 %v936_v7 }
  0x1d   : > { %868 = vmatprep.subr.bf16.mxu0 %v937_v8  ;;  %910 = vmatprep.subr.bf16.mxu1 %v937_v8 }
  0x20   : > { %869 = vmatpush3.bf16.msra.mxu0 %v937_v8  ;;  %918 = vmatpush3.bf16.msra.mxu1 %v937_v8 }
  0x21   : > { %870 = vmatprep.subr.bf16.mxu0 %v938_v9  ;;  %911 = vmatprep.subr.bf16.mxu1 %v938_v9 }
  0x24   : > { %871 = vmatpush3.bf16.msra.mxu0 %v938_v9  ;;  %919 = vmatpush3.bf16.msra.mxu1 %v938_v9 }
  0x27   : > { %873 = vmatmul.mubr.bf16.vlgmr.msra.gmra.mrb[0].mxu0 %v940_v10  ;;  %889 = vmatmul.mubr.bf16.vlgmr.msra.gmra.mrb[0].mxu1 %v942_v11 }
  0x28   : > { %876 = vmatprep.mubr.bf16.mxu0 %v943_v12  ;;  %892 = vmatprep.mubr.bf16.mxu1 %v945_v13 }
  0x2f   : > { %877 = vmatmul.mubr.bf16.gmra.mrb[4].mxu0 %v944_v14  ;;  %893 = vmatmul.mubr.bf16.gmra.mrb[4].mxu1 %v946_v15 }
  0x30   : > { %880 = vmatprep.mubr.bf16.mxu0 %v947_v16  ;;  %896 = vmatprep.mubr.bf16.mxu1 %v949_v17 }
  0x37   : > { %881 = vmatmul.mubr.bf16.gmra.mrb[8].mxu0 %v948_v18  ;;  %897 = vmatmul.mubr.bf16.gmra.mrb[8].mxu1 %v950_v19 }
  0x38   : > { %884 = vmatprep.mubr.bf16.mxu0 %v951_v20  ;;  %900 = vmatprep.mubr.bf16.mxu1 %v953_v21 }
  0x3f   : > { %885 = vmatmul.mubr.bf16.gmra.mrb[12].mxu0 %v952_v22  ;;  %901 = vmatmul.mubr.bf16.gmra.mrb[12].mxu1 %v954_v23 }
  0xfa   : > { %v874_v25 = vpop.f32.mrb[0].mxu0  ;;  %v890_v26 = vpop.f32.mrb[0].mxu1 }
  0xfb   : > { %v573_v27 = vmul.f32 %v874_v25, %v1069_v24  ;;  %v440_v28 = vpop.f32.mrb[1].mxu0  ;;  %v1078_v29 = vmul.f32 %v890_v26, %v1069_v24  ;;  %v504_v30 = vpop.f32.mrb[1].mxu1 }
  0xfc   : > { %v571_v31 = vmul.f32 %v1069_v24, %v440_v28  ;;  %v875_v32 = vpop.f32.mrb[2].mxu0  ;;  %v1082_v33 = vmul.f32 %v1069_v24, %v504_v30  ;;  %v891_v34 = vpop.f32.mrb[2].mxu1 }
  0xfd   : > { %605 = vst [vmem:[%s1074_s22 + $0x10] sm:$0xff] %v573_v27  ;;  %v574_v35 = vmul.f32 %v875_v32, %v1069_v24  ;;  %v443_v36 = vpop.f32.mrb[3].mxu0  ;;  %621 = vst [vmem:[%s1074_s22 + $0x90] sm:$0xff] %v1078_v29  ;;  %v1089_v37 = vmul.f32 %v891_v34, %v1069_v24  ;;  %v507_v38 = vpop.f32.mrb[3].mxu1 }
  0xfe   : > { %603 = vst [vmem:[%s1074_s22] sm:$0xff] %v571_v31  ;;  %v572_v39 = vmul.f32 %v1069_v24, %v443_v36  ;;  %619 = vst [vmem:[%s1074_s22 + $0x80] sm:$0xff] %v1082_v33  ;;  %v1096_v40 = vmul.f32 %v1069_v24, %v507_v38 }
  0xff   : > { %606 = vst [vmem:[%s1074_s22 + $0x18] sm:$0xff] %v574_v35  ;;  %622 = vst [vmem:[%s1074_s22 + $0x98] sm:$0xff] %v1089_v37 }
 0x100   : > { %604 = vst [vmem:[%s1074_s22 + $0x8] sm:$0xff] %v572_v39  ;;  %620 = vst [vmem:[%s1074_s22 + $0x88] sm:$0xff] %v1096_v40 }
 0x102   : > { %v878_v41 = vpop.f32.mrb[4].mxu0  ;;  %v894_v42 = vpop.f32.mrb[4].mxu1 }
 0x103   : > { %v577_v43 = vmul.f32 %v878_v41, %v1069_v24  ;;  %v456_v44 = vpop.f32.mrb[5].mxu0  ;;  %v1106_v45 = vmul.f32 %v894_v42, %v1069_v24  ;;  %v520_v46 = vpop.f32.mrb[5].mxu1 }
 0x104   : > { %v575_v47 = vmul.f32 %v1069_v24, %v456_v44  ;;  %v879_v48 = vpop.f32.mrb[6].mxu0  ;;  %v1110_v49 = vmul.f32 %v1069_v24, %v520_v46  ;;  %v895_v50 = vpop.f32.mrb[6].mxu1 }
 0x105   : > { %609 = vst [vmem:[%s1074_s22 + $0x30] sm:$0xff] %v577_v43  ;;  %v578_v51 = vmul.f32 %v879_v48, %v1069_v24  ;;  %v459_v52 = vpop.f32.mrb[7].mxu0  ;;  %625 = vst [vmem:[%s1074_s22 + $0xb0] sm:$0xff] %v1106_v45  ;;  %v1117_v53 = vmul.f32 %v895_v50, %v1069_v24  ;;  %v523_v54 = vpop.f32.mrb[7].mxu1  ;;  %959 = vmaxabs.init.f32.vacc0 %v573_v27, %v577_v43 }
 0x106   : > { %607 = vst [vmem:[%s1074_s22 + $0x20] sm:$0xff] %v575_v47  ;;  %v576_v55 = vmul.f32 %v1069_v24, %v459_v52  ;;  %623 = vst [vmem:[%s1074_s22 + $0xa0] sm:$0xff] %v1110_v49  ;;  %v1124_v56 = vmul.f32 %v1069_v24, %v523_v54 }
 0x107   : > { %610 = vst [vmem:[%s1074_s22 + $0x38] sm:$0xff] %v578_v51  ;;  %626 = vst [vmem:[%s1074_s22 + $0xb8] sm:$0xff] %v1117_v53  ;;  %960 = vmaxabs.f32.vacc0 %v571_v31, %v575_v47 }
 0x108   : > { %608 = vst [vmem:[%s1074_s22 + $0x28] sm:$0xff] %v576_v55  ;;  %624 = vst [vmem:[%s1074_s22 + $0xa8] sm:$0xff] %v1124_v56 }
 0x109   : > { %961 = vmaxabs.f32.vacc0 %v574_v35, %v578_v51 }
 0x10a   : > { %v882_v57 = vpop.f32.mrb[8].mxu0  ;;  %v898_v58 = vpop.f32.mrb[8].mxu1 }
 0x10b   : > { %962 = vmaxabs.f32.vacc0 %v572_v39, %v576_v55  ;;  %v581_v59 = vmul.f32 %v882_v57, %v1069_v24  ;;  %v472_v60 = vpop.f32.mrb[9].mxu0  ;;  %v597_v61 = vmul.f32 %v898_v58, %v1069_v24  ;;  %v536_v62 = vpop.f32.mrb[9].mxu1 }
 0x10c   : > { %v579_v63 = vmul.f32 %v1069_v24, %v472_v60  ;;  %v883_v0 = vpop.f32.mrb[10].mxu0  ;;  %v595_v1 = vmul.f32 %v1069_v24, %v536_v62  ;;  %v899_v2 = vpop.f32.mrb[10].mxu1 }
 0x10d   : > { %613 = vst [vmem:[%s1074_s22 + $0x50] sm:$0xff] %v581_v59  ;;  %v582_v3 = vmul.f32 %v883_v0, %v1069_v24  ;;  %v475_v4 = vpop.f32.mrb[11].mxu0  ;;  %629 = vst [vmem:[%s1074_s22 + $0xd0] sm:$0xff] %v597_v61  ;;  %v598_v5 = vmul.f32 %v899_v2, %v1069_v24  ;;  %v539_v6 = vpop.f32.mrb[11].mxu1 }
 0x10e   : > { %611 = vst [vmem:[%s1074_s22 + $0x40] sm:$0xff] %v579_v63  ;;  %v580_v7 = vmul.f32 %v1069_v24, %v475_v4  ;;  %627 = vst [vmem:[%s1074_s22 + $0xc0] sm:$0xff] %v595_v1  ;;  %v596_v8 = vmul.f32 %v1069_v24, %v539_v6  ;;  %963 = vmaxabs.f32.vacc0 %v581_v59, %v579_v63 }
 0x10f   : > { %614 = vst [vmem:[%s1074_s22 + $0x58] sm:$0xff] %v582_v3  ;;  %630 = vst [vmem:[%s1074_s22 + $0xd8] sm:$0xff] %v598_v5 }
 0x110   : > { %612 = vst [vmem:[%s1074_s22 + $0x48] sm:$0xff] %v580_v7  ;;  %628 = vst [vmem:[%s1074_s22 + $0xc8] sm:$0xff] %v596_v8  ;;  %964 = vmaxabs.f32.vacc0 %v582_v3, %v580_v7 }
 0x112   : > { %v886_v9 = vpop.f32.mrb[12].mxu0  ;;  %v902_v10 = vpop.f32.mrb[12].mxu1 }
 0x113   : > { %v585_v11 = vmul.f32 %v886_v9, %v1069_v24  ;;  %v488_v12 = vpop.f32.mrb[13].mxu0  ;;  %v601_v13 = vmul.f32 %v902_v10, %v1069_v24  ;;  %v552_v14 = vpop.f32.mrb[13].mxu1 }
 0x114   : > { %v583_v15 = vmul.f32 %v1069_v24, %v488_v12  ;;  %v887_v16 = vpop.f32.mrb[14].mxu0  ;;  %v599_v17 = vmul.f32 %v1069_v24, %v552_v14  ;;  %v903_v18 = vpop.f32.mrb[14].mxu1 }
 0x115   : > { %617 = vst [vmem:[%s1074_s22 + $0x70] sm:$0xff] %v585_v11  ;;  %v586_v19 = vmul.f32 %v887_v16, %v1069_v24  ;;  %v491_v20 = vpop.f32.mrb[15].mxu0  ;;  %633 = vst [vmem:[%s1074_s22 + $0xf0] sm:$0xff] %v601_v13  ;;  %v602_v21 = vmul.f32 %v903_v18, %v1069_v24  ;;  %v555_v22 = vpop.f32.mrb[15].mxu1 }
 0x116   : > { %615 = vst [vmem:[%s1074_s22 + $0x60] sm:$0xff] %v583_v15  ;;  %v584_v23 = vmul.f32 %v1069_v24, %v491_v20  ;;  %631 = vst [vmem:[%s1074_s22 + $0xe0] sm:$0xff] %v599_v17  ;;  %v600_v25 = vmul.f32 %v1069_v24, %v555_v22  ;;  %965 = vmaxabs.f32.vacc0 %v585_v11, %v583_v15 }
 0x117   : > { %618 = vst [vmem:[%s1074_s22 + $0x78] sm:$0xff] %v586_v19  ;;  %634 = vst [vmem:[%s1074_s22 + $0xf8] sm:$0xff] %v602_v21 }
 0x118   : > { %616 = vst [vmem:[%s1074_s22 + $0x68] sm:$0xff] %v584_v23  ;;  %632 = vst [vmem:[%s1074_s22 + $0xe8] sm:$0xff] %v600_v25  ;;  %966 = vmaxabs.f32.vacc0 %v1078_v29, %v586_v19 }
 0x11a   : > { %967 = vmaxabs.f32.vacc0 %v1082_v33, %v584_v23 }
 0x11c   : > { %968 = vmaxabs.f32.vacc0 %v1089_v37, %v1106_v45 }
 0x11e   : > { %969 = vmaxabs.f32.vacc0 %v1096_v40, %v1110_v49 }
 0x120   : > { %970 = vmaxabs.f32.vacc0 %v1117_v53, %v597_v61 }
 0x122   : > { %971 = vmaxabs.f32.vacc0 %v1124_v56, %v595_v1 }
 0x124   : > { %972 = vmaxabs.f32.vacc0 %v598_v5, %v601_v13 }
 0x126   : > { %973 = vmaxabs.f32.vacc0 %v596_v8, %v599_v17 }
 0x128   : > { %974 = vmaxabs.f32.vacc0 %v602_v21, %v600_v25 }
 0x12a   : > { %v975_v24 = vmovacc.low.even.vacc0 }
 0x12c   : > { %698 = vmax.xlane.f32.xlu0 %v975_v24 }
 0x1b9   : > { %v699_v26 = vpop.xlane.xlu0 %698 }
 0x1ba   : > { %v700_v27 = vrot.slane %v699_v26, 4 }
 0x1bc   : > { %v701_v28 = vmax.f32 %v699_v26, %v700_v27 }
 0x1be   : > { %v702_v29 = vrot.slane %v701_v28, 2 }
 0x1c0   : > { %v703_v30 = vmax.f32 %v701_v28, %v702_v29 }
 0x1c2   : > { %v704_v31 = vrot.slane %v703_v30, 1 }
 0x1c4   : > { %v705_v32 = vmax.f32 %v703_v30, %v704_v31 }
 0x1c6   : > { %920 = vpush %v705_v32 }
 0x1f7   : > { %s921_s26 = spop %920 }
 0x1f8   : > { %v707_v33 = vstv %s921_s26 }
 0x1f9   : > { %708 = vst [vmem:[%s212_s25] sm:$0xff] %v707_v33 }
 0x1fa PF: > { %s16_s17 = sadd.s32 1, %s978_s17  }
 0x1fb   : > { %p13_p5 = scmp.ge.s32.totalorder %s16_s17, 4  }
 0x1fd   :  { %15 = sbr.rel (!%p13_p5) target bundleno = 2 (0x2), region = 74 }

// kernel: _lambda_.16
= control target key start
LH: loop header
LB: loop body
LE: loop exit
PB: predicated region body
PF: predicated region fallthrough
CT: control target
= control target key end

     0   :  { %10 = vsyncpa [#allocation3], 0  ;;  %s187_s0 = inlined_call_operand.vmem [shape: f32[1,2], index: 0, kind: input, shape index: {}]   ;;  %s188_s1 = inlined_call_operand.vmem [shape: bf16[32,128], index: 1, kind: input, shape index: {}]   ;;  %s189_s2 = inlined_call_operand.vmem [shape: bf16[32,128], index: 2, kind: input, shape index: {}]   ;;  %s190_s3 = inlined_call_operand.vmem [shape: f32[32,128], index: 3, kind: output, shape index: {0}]   ;;  %s191_s4 = inlined_call_operand.vmem [shape: f32[8,128], index: 4, kind: output, shape index: {1}]  }
   0x1   :  { %s17_s17 = sshll.u32 %s187_s0, 4  ;;  %s18_s17 = int_to_ptr.vmem [resolvable:$true] %s17_s17 }
   0x2   :  { %s114_s18 = scalar_lea.vmem %s18_s17, 16  ;;  %p119_p1 = scmp.lt.s32.totalorder %s18_s17, %s18_s17 }
   0x3   :  { %p115_p0 = scmp.ne.s32.totalorder %s18_s17, %s114_s18  ;;  %p120_p2 = scmp.lt.s32.totalorder %s114_s18, %s114_s18 }
   0x5   :  { %p121_p3 = por %p120_p2, %p119_p1 }
   0x7   :  { %p122_p4 = pnand %p121_p3, %p115_p0 }
   0x9   :  { %125 = shalt.err (!%p122_p4)
}
   0xa   :  { %s131_s19 = smov [#allocation2]  }
   0xb   :  { %20 = dma.vmem_to_smem %s18_s17, 16, %s131_s19, [#allocation3]  }
   0xc   :  { %126 = dma.done.wait [#allocation3], 16  }
   0xd   :  { %127 = vsyncadd [#allocation3], 4294967280 }
   0xe   :  { %28 = sfence }
   0xf   :  { %v94_v0 = vld [vmem:[%s188_s1] sm:$0xff]   ;;  %v109_v1 = vld [vmem:[%s188_s1 + $0x8] sm:$0xff]   ;;  %s37_s0 = sld [smem:[#allocation2]]  ;;  %s92_s24 = sld [smem:[#allocation2 + $0x1]] }
  0x10   :  { %v102_v2 = vld [vmem:[%s189_s2] sm:$0xff]   ;;  %v110_v3 = vld [vmem:[%s189_s2 + $0x8] sm:$0xff]   ;;  %v95_v4 = vunpack.c.l.bf16 %v94_v0  ;;  %v96_v5 = vunpack.c.h.bf16 %v94_v0  ;;  %v99_v6 = vunpack.c.l.bf16 %v109_v1  ;;  %v100_v7 = vunpack.c.h.bf16 %v109_v1 }
  0x11   :  { %v103_v8 = vunpack.c.l.bf16 %v102_v2  ;;  %v104_v9 = vunpack.c.h.bf16 %v102_v2  ;;  %v107_v10 = vunpack.c.l.bf16 %v110_v3  ;;  %v108_v11 = vunpack.c.h.bf16 %v110_v3 }
  0x15   :  { %v38_v12 = vstv %s37_s0  ;;  %v52_v17 = vstv %s92_s24 }
  0x16   :  { %v39_v13 = vmul.f32 %v95_v4, %v38_v12  ;;  %v40_v14 = vmul.f32 %v96_v5, %v38_v12  ;;  %v41_v15 = vmul.f32 %v99_v6, %v38_v12  ;;  %v42_v16 = vmul.f32 %v100_v7, %v38_v12 }
  0x17   :  { %v53_v18 = vmul.f32 %v103_v8, %v52_v17  ;;  %v54_v19 = vmul.f32 %v104_v9, %v52_v17  ;;  %v55_v20 = vmul.f32 %v107_v10, %v52_v17  ;;  %v56_v21 = vmul.f32 %v108_v11, %v52_v17 }
  0x19   :  { %v57_v22 = vadd.f32 %v53_v18, %v39_v13  ;;  %v58_v23 = vadd.f32 %v54_v19, %v40_v14  ;;  %v59_v24 = vadd.f32 %v55_v20, %v41_v15  ;;  %v60_v25 = vadd.f32 %v56_v21, %v42_v16 }
  0x1b   :  { %61 = vst [vmem:[%s190_s3] sm:$0xff] %v57_v22  ;;  %62 = vst [vmem:[%s190_s3 + $0x8] sm:$0xff] %v58_v23  ;;  %128 = vmaxabs.init.f32.vacc0 %v57_v22, %v58_v23 }
  0x1c   :  { %63 = vst [vmem:[%s190_s3 + $0x10] sm:$0xff] %v59_v24  ;;  %64 = vst [vmem:[%s190_s3 + $0x18] sm:$0xff] %v60_v25 }
  0x1d   :  { %129 = vmaxabs.f32.vacc0 %v59_v24, %v60_v25 }
  0x1f   :  { %v130_v26 = vmovacc.low.even.vacc0 }
  0x21   :  { %72 = vmax.xlane.f32.xlu0 %v130_v26 }
  0xae   :  { %v73_v27 = vpop.xlane.xlu0 %72 }
  0xaf   :  { %v74_v28 = vrot.slane %v73_v27, 4 }
  0xb1   :  { %v75_v29 = vmax.f32 %v73_v27, %v74_v28 }
  0xb3   :  { %v76_v30 = vrot.slane %v75_v29, 2 }
  0xb5   :  { %v77_v31 = vmax.f32 %v75_v29, %v76_v30 }
  0xb7   :  { %v78_v32 = vrot.slane %v77_v31, 1 }
  0xb9   :  { %v79_v33 = vmax.f32 %v77_v31, %v78_v32 }
  0xbb   :  { %111 = vpush %v79_v33 }
  0xec   :  { %s112_s9 = spop %111 }
  0xed   :  { %v81_v34 = vstv %s112_s9 }
  0xee   :  { %82 = vst [vmem:[%s191_s4] sm:$0xff] %v81_v34 }
  0xef   :  { %91 = vsyncpa [#allocation3], 1 }

// kernel: _lambda_.17
= control target key start
LH: loop header
LB: loop body
LE: loop exit
PB: predicated region body
PF: predicated region fallthrough
CT: control target
= control target key end

     0   :  { %s95_s9 = smov 1e-12   ;;  %s132_s0 = inlined_call_operand.<no memory space> [shape: f32[1,1], index: 0, kind: input, shape index: {}]   ;;  %s133_s1 = inlined_call_operand.vmem [shape: f32[32,128], index: 1, kind: input, shape index: {}]   ;;  %s134_s2 = inlined_call_operand.vmem [shape: bf16[32,128], index: 2, kind: output, shape index: {}]  }
   0x1   :  { %s13_s12 = smax.f32 %s95_s9, %s132_s0  ;;  %v14_v2 = vld [vmem:[%s133_s1] sm:$0xff]  ;;  %v15_v3 = vld [vmem:[%s133_s1 + $0x8] sm:$0xff]  ;;  %v16_v4 = vld [vmem:[%s133_s1 + $0x10] sm:$0xff] }
   0x2   :  { %v18_v0 = vstv %s13_s12  ;;  %v17_v5 = vld [vmem:[%s133_s1 + $0x18] sm:$0xff] }
   0x3   :  { %93 = vrcp.f32 %v18_v0 }
   0xd   :  { %v94_v1 = vpop.eup %93 }
   0xe   :  { %86 = vpush %v94_v1 }
  0x3f   :  { %s87_s15 = spop %86 }
  0x40   :  { %s21_s0 = smul.f32 255.0, %s87_s15 }
  0x42   :  { %v22_v6 = vstv %s21_s0 }
  0x43   :  { %v23_v7 = vmul.f32 %v22_v6, %v14_v2  ;;  %v24_v8 = vmul.f32 %v22_v6, %v15_v3  ;;  %v25_v9 = vmul.f32 %v22_v6, %v16_v4  ;;  %v26_v10 = vmul.f32 %v22_v6, %v17_v5 }
  0x45   :  { %v88_v11 = vround.rtne.f32 %v23_v7  ;;  %v89_v12 = vround.rtne.f32 %v24_v8  ;;  %v90_v13 = vround.rtne.f32 %v25_v9  ;;  %v91_v14 = vround.rtne.f32 %v26_v10 }
  0x47   :  { %v63_v15 = vclamps-f32 %v88_v11, 255.0  ;;  %v64_v16 = vclamps-f32 %v89_v12, 255.0  ;;  %v65_v17 = vclamps-f32 %v90_v13, 255.0  ;;  %v66_v18 = vclamps-f32 %v91_v14, 255.0 }
  0x49   :  { %v78_v19 = vpack.c.bf16 %v64_v16, %v63_v15  ;;  %v83_v20 = vpack.c.bf16 %v66_v18, %v65_v17 }
  0x4b   :  { %79 = vst [vmem:[%s134_s2] sm:$0xff] %v78_v19   ;;  %85 = vst [vmem:[%s134_s2 + $0x8] sm:$0xff] %v83_v20  }

// kernel: _lambda_.18
= control target key start
LH: loop header
LB: loop body
LE: loop exit
PB: predicated region body
PF: predicated region fallthrough
CT: control target
= control target key end

     0   :  { %s49_s0 = inlined_call_operand.vmem [shape: bf16[16,256], index: 0, kind: input, shape index: {}]   ;;  %s50_s1 = inlined_call_operand.vmem [shape: bf16[16,128], index: 1, kind: output, shape index: {}]  }
   0x1   :  { %v8_v0 = vld [vmem:[%s49_s0] sm:$0xff]  ;;  %v9_v1 = vld [vmem:[%s49_s0 + $0x8] sm:$0xff] }
   0x2   :  { %v12_v2 = vrot.slane %v8_v0, 4  ;;  %v13_v3 = vrot.slane %v9_v1, 4 }
   0x4   :  { %v16_v4 = vmax.bf16 %v12_v2, %v8_v0  ;;  %v17_v5 = vmax.bf16 %v13_v3, %v9_v1 }
   0x6   :  { %v29_v6 = vcombine.low %v16_v4, %v17_v5 }
   0x8   :  { %28 = vst [vmem:[%s50_s1] sm:$0xff] %v29_v6  }

// kernel: _lambda_.19
= control target key start
LH: loop header
LB: loop body
LE: loop exit
PB: predicated region body
PF: predicated region fallthrough
CT: control target
= control target key end

     0   :  { %s126_s10 = smov 120   ;;  %vm104_vm0 = vcmask 60416   ;;  %s249_s0 = inlined_call_operand.vmem [shape: bf16[128,16], index: 0, kind: input, shape index: {}]   ;;  %s250_s1 = inlined_call_operand.vmem [shape: bf16[128,8], index: 1, kind: output, shape index: {}]  }
   0x1   :  { %v10_v0 = vld [vmem:[%s249_s0 + $0x8] sm:$0xf]  ;;  %v8_v1 = vld [vmem:[%s249_s0] sm:$0xf]  ;;  %v11_v2 = vld [vmem:[%s249_s0 + $0xc] sm:$0xf] }
   0x2   :  { %44 = vrot.lane.b32.xlu1 %v10_v0, %s126_s10  ;;  %40 = vrot.lane.b32.xlu0 %v8_v1, %s126_s10  ;;  %v9_v3 = vld [vmem:[%s249_s0 + $0x4] sm:$0xf]  ;;  %v13_v4 = vld [vmem:[%s249_s0 + $0x14] sm:$0xf] }
   0x3   :  { %v12_v5 = vld [vmem:[%s249_s0 + $0x10] sm:$0xf]  ;;  %v15_v6 = vld [vmem:[%s249_s0 + $0x1c] sm:$0xf]  ;;  %v14_v7 = vld [vmem:[%s249_s0 + $0x18] sm:$0xf] }
   0x4   :  { %v17_v8 = vld [vmem:[%s249_s0 + $0x24] sm:$0xf]  ;;  %v16_v9 = vld [vmem:[%s249_s0 + $0x20] sm:$0xf]  ;;  %v19_v10 = vld [vmem:[%s249_s0 + $0x2c] sm:$0xf] }
   0x5   :  { %v18_v11 = vld [vmem:[%s249_s0 + $0x28] sm:$0xf]  ;;  %v21_v12 = vld [vmem:[%s249_s0 + $0x34] sm:$0xf]  ;;  %v20_v13 = vld [vmem:[%s249_s0 + $0x30] sm:$0xf] }
   0x6   :  { %46 = vrot.lane.b32.xlu1 %v11_v2, %s126_s10  ;;  %42 = vrot.lane.b32.xlu0 %v9_v3, %s126_s10  ;;  %v23_v14 = vld [vmem:[%s249_s0 + $0x3c] sm:$0xf]  ;;  %v22_v15 = vld [vmem:[%s249_s0 + $0x38] sm:$0xf] }
   0xa   :  { %50 = vrot.lane.b32.xlu1 %v13_v4, %s126_s10  ;;  %48 = vrot.lane.b32.xlu0 %v12_v5, %s126_s10 }
   0xe   :  { %54 = vrot.lane.b32.xlu1 %v15_v6, %s126_s10  ;;  %52 = vrot.lane.b32.xlu0 %v14_v7, %s126_s10 }
  0x12   :  { %58 = vrot.lane.b32.xlu1 %v17_v8, %s126_s10  ;;  %56 = vrot.lane.b32.xlu0 %v16_v9, %s126_s10 }
  0x16   :  { %62 = vrot.lane.b32.xlu1 %v19_v10, %s126_s10  ;;  %60 = vrot.lane.b32.xlu0 %v18_v11, %s126_s10 }
  0x1a   :  { %66 = vrot.lane.b32.xlu1 %v21_v12, %s126_s10  ;;  %64 = vrot.lane.b32.xlu0 %v20_v13, %s126_s10 }
  0x1e   :  { %70 = vrot.lane.b32.xlu1 %v23_v14, %s126_s10  ;;  %68 = vrot.lane.b32.xlu0 %v22_v15, %s126_s10 }
  0x74   :  { %v45_v16 = vpop.permute.xlu1 %44  ;;  %v41_v17 = vpop.permute.xlu0 %40 }
  0x75   :  { %v90_v18 = vmax.bf16 %v45_v16, %v10_v0  ;;  %v88_v19 = vmax.bf16 %v41_v17, %v8_v1 }
  0x77   :  { %107 = vst.msk [vmem:[%s250_s1 + $0x8] sm:$0xf] %vm104_vm0, %v90_v18  ;;  %105 = vst.msk [vmem:[%s250_s1] sm:$0xf] %vm104_vm0, %v88_v19 }
  0x78   :  { %v47_v20 = vpop.permute.xlu1 %46  ;;  %v43_v21 = vpop.permute.xlu0 %42 }
  0x79   :  { %v91_v22 = vmax.bf16 %v47_v20, %v11_v2  ;;  %v89_v23 = vmax.bf16 %v43_v21, %v9_v3 }
  0x7b   :  { %108 = vst.msk [vmem:[%s250_s1 + $0xc] sm:$0xf] %vm104_vm0, %v91_v22  ;;  %106 = vst.msk [vmem:[%s250_s1 + $0x4] sm:$0xf] %vm104_vm0, %v89_v23 }
  0x7c   :  { %v51_v24 = vpop.permute.xlu1 %50  ;;  %v49_v25 = vpop.permute.xlu0 %48 }
  0x7d   :  { %v93_v26 = vmax.bf16 %v51_v24, %v13_v4  ;;  %v92_v27 = vmax.bf16 %v49_v25, %v12_v5 }
  0x7f   :  { %110 = vst.msk [vmem:[%s250_s1 + $0x14] sm:$0xf] %vm104_vm0, %v93_v26  ;;  %109 = vst.msk [vmem:[%s250_s1 + $0x10] sm:$0xf] %vm104_vm0, %v92_v27 }
  0x80   :  { %v55_v28 = vpop.permute.xlu1 %54  ;;  %v53_v29 = vpop.permute.xlu0 %52 }
  0x81   :  { %v95_v30 = vmax.bf16 %v55_v28, %v15_v6  ;;  %v94_v31 = vmax.bf16 %v53_v29, %v14_v7 }
  0x83   :  { %112 = vst.msk [vmem:[%s250_s1 + $0x1c] sm:$0xf] %vm104_vm0, %v95_v30  ;;  %111 = vst.msk [vmem:[%s250_s1 + $0x18] sm:$0xf] %vm104_vm0, %v94_v31 }
  0x84   :  { %v59_v32 = vpop.permute.xlu1 %58  ;;  %v57_v33 = vpop.permute.xlu0 %56 }
  0x85   :  { %v97_v34 = vmax.bf16 %v59_v32, %v17_v8  ;;  %v96_v35 = vmax.bf16 %v57_v33, %v16_v9 }
  0x87   :  { %114 = vst.msk [vmem:[%s250_s1 + $0x24] sm:$0xf] %vm104_vm0, %v97_v34  ;;  %113 = vst.msk [vmem:[%s250_s1 + $0x20] sm:$0xf] %vm104_vm0, %v96_v35 }
  0x88   :  { %v63_v36 = vpop.permute.xlu1 %62  ;;  %v61_v37 = vpop.permute.xlu0 %60 }
  0x89   :  { %v99_v38 = vmax.bf16 %v63_v36, %v19_v10  ;;  %v98_v39 = vmax.bf16 %v61_v37, %v18_v11 }
  0x8b   :  { %116 = vst.msk [vmem:[%s250_s1 + $0x2c] sm:$0xf] %vm104_vm0, %v99_v38  ;;  %115 = vst.msk [vmem:[%s250_s1 + $0x28] sm:$0xf] %vm104_vm0, %v98_v39 }
  0x8c   :  { %v67_v40 = vpop.permute.xlu1 %66  ;;  %v65_v41 = vpop.permute.xlu0 %64 }
  0x8d   :  { %v101_v42 = vmax.bf16 %v67_v40, %v21_v12  ;;  %v100_v43 = vmax.bf16 %v65_v41, %v20_v13 }
  0x8f   :  { %118 = vst.msk [vmem:[%s250_s1 + $0x34] sm:$0xf] %vm104_vm0, %v101_v42  ;;  %117 = vst.msk [vmem:[%s250_s1 + $0x30] sm:$0xf] %vm104_vm0, %v100_v43 }
  0x90   :  { %v71_v44 = vpop.permute.xlu1 %70  ;;  %v69_v45 = vpop.permute.xlu0 %68 }
  0x91   :  { %v103_v46 = vmax.bf16 %v71_v44, %v23_v14  ;;  %v102_v47 = vmax.bf16 %v69_v45, %v22_v15 }
  0x93   :  { %120 = vst.msk [vmem:[%s250_s1 + $0x3c] sm:$0xf] %vm104_vm0, %v103_v46  ;;  %119 = vst.msk [vmem:[%s250_s1 + $0x38] sm:$0xf] %vm104_vm0, %v102_v47 }

// kernel: _lambda_.20
= control target key start
LH: loop header
LB: loop body
LE: loop exit
PB: predicated region body
PF: predicated region fallthrough
CT: control target
= control target key end

     0   :  { %s677_s2 = inlined_call_operand.vmem [shape: bf16[512,128], index: 2, kind: input, shape index: {}]   ;;  %s678_s1 = inlined_call_operand.vmem [shape: bf16[16,512], index: 1, kind: input, shape index: {}]   ;;  %s679_s0 = inlined_call_operand.<no memory space> [shape: f32[1,1], index: 0, kind: input, shape index: {}]   ;;  %s680_s3 = inlined_call_operand.vmem [shape: f32[16,128], index: 3, kind: output, shape index: {0}]   ;;  %s681_s4 = inlined_call_operand.vmem [shape: f32[8,128], index: 4, kind: output, shape index: {1}]  }
   0x1   :  { %v493_v0 = vld [vmem:[%s677_s2 + $0x40] sm:$0xff]   ;;  %v497_v4 = vld [vmem:[%s677_s2 + $0x48] sm:$0xff]   ;;  %v501_v8 = vld [vmem:[%s677_s2 + $0x50] sm:$0xff]  }
   0x2   :  { %v494_v1 = vld [vmem:[%s677_s2 + $0xc0] sm:$0xff]   ;;  %446 = vmatprep.subr.bf16.mxu0 %v493_v0  ;;  %v498_v5 = vld [vmem:[%s677_s2 + $0xc8] sm:$0xff]   ;;  %v502_v9 = vld [vmem:[%s677_s2 + $0xd0] sm:$0xff]  }
   0x3   :  { %v495_v2 = vld [vmem:[%s677_s2] sm:$0xff]   ;;  %468 = vmatprep.subr.bf16.mxu1 %v494_v1  ;;  %v499_v6 = vld [vmem:[%s677_s2 + $0x8] sm:$0xff]   ;;  %v503_v10 = vld [vmem:[%s677_s2 + $0x10] sm:$0xff]  }
   0x4   :  { %v496_v3 = vld [vmem:[%s677_s2 + $0x80] sm:$0xff]   ;;  %447 = vmatpush3.bf16.msra.mxu0 %v495_v2  ;;  %v500_v7 = vld [vmem:[%s677_s2 + $0x88] sm:$0xff]   ;;  %v504_v11 = vld [vmem:[%s677_s2 + $0x90] sm:$0xff]  }
   0x5   :  { %469 = vmatpush3.bf16.msra.mxu1 %v496_v3  ;;  %448 = vmatprep.subr.bf16.mxu0 %v497_v4  ;;  %v505_v12 = vld [vmem:[%s677_s2 + $0x58] sm:$0xff]   ;;  %v509_v16 = vld [vmem:[%s677_s2 + $0x60] sm:$0xff]   ;;  %v513_v20 = vld [vmem:[%s677_s2 + $0x68] sm:$0xff]  }
   0x6   :  { %470 = vmatprep.subr.bf16.mxu1 %v498_v5  ;;  %v506_v13 = vld [vmem:[%s677_s2 + $0xd8] sm:$0xff]   ;;  %v510_v17 = vld [vmem:[%s677_s2 + $0xe0] sm:$0xff]   ;;  %v514_v21 = vld [vmem:[%s677_s2 + $0xe8] sm:$0xff]  }
   0x7   :  { %v507_v14 = vld [vmem:[%s677_s2 + $0x18] sm:$0xff]   ;;  %v511_v18 = vld [vmem:[%s677_s2 + $0x20] sm:$0xff]   ;;  %v515_v22 = vld [vmem:[%s677_s2 + $0x28] sm:$0xff]  }
   0x8   :  { %449 = vmatpush3.bf16.msra.mxu0 %v499_v6  ;;  %v508_v15 = vld [vmem:[%s677_s2 + $0x98] sm:$0xff]   ;;  %v512_v19 = vld [vmem:[%s677_s2 + $0xa0] sm:$0xff]   ;;  %v516_v23 = vld [vmem:[%s677_s2 + $0xa8] sm:$0xff]  }
   0x9   :  { %471 = vmatpush3.bf16.msra.mxu1 %v500_v7  ;;  %450 = vmatprep.subr.bf16.mxu0 %v501_v8  ;;  %v517_v24 = vld [vmem:[%s677_s2 + $0x70] sm:$0xff]   ;;  %v521_v28 = vld [vmem:[%s677_s2 + $0x78] sm:$0xff]  }
   0xa   :  { %472 = vmatprep.subr.bf16.mxu1 %v502_v9  ;;  %v518_v25 = vld [vmem:[%s677_s2 + $0xf0] sm:$0xff]   ;;  %v522_v29 = vld [vmem:[%s677_s2 + $0xf8] sm:$0xff]  }
   0xb   :  { %v519_v26 = vld [vmem:[%s677_s2 + $0x30] sm:$0xff]   ;;  %v523_v30 = vld [vmem:[%s677_s2 + $0x38] sm:$0xff]  }
   0xc   :  { %451 = vmatpush3.bf16.msra.mxu0 %v503_v10  ;;  %v520_v27 = vld [vmem:[%s677_s2 + $0xb0] sm:$0xff]   ;;  %v524_v31 = vld [vmem:[%s677_s2 + $0xb8] sm:$0xff]   ;;  %s531_s2 = smov 1e-12  }
   0xd   :  { %473 = vmatpush3.bf16.msra.mxu1 %v504_v11  ;;  %452 = vmatprep.subr.bf16.mxu0 %v505_v12  ;;  %v525_v32 = vld [vmem:[%s678_s1] ss:$16 sps:$4 sm:$0xff]   ;;  %v527_v33 = vld [vmem:[%s678_s1 + $0x4] ss:$16 sps:$4 sm:$0xff]   ;;  %v528_v34 = vld [vmem:[%s678_s1 + $0x8] ss:$16 sps:$4 sm:$0xff]   ;;  %s381_s11 = smax.f32 %s531_s2, %s679_s0 }
   0xe   :  { %474 = vmatprep.subr.bf16.mxu1 %v506_v13  ;;  %v530_v35 = vld [vmem:[%s678_s1 + $0xc] ss:$16 sps:$4 sm:$0xff]   ;;  %330 = vmatprep.mubr.bf16.mxu0 %v527_v33  ;;  %s382_s12 = smul.f32 6.607586e-06, %s381_s11 }
   0xf   :  { %371 = vmatprep.mubr.bf16.mxu1 %v530_v35 }
  0x10   :  { %453 = vmatpush3.bf16.msra.mxu0 %v507_v14  ;;  %v383_v47 = vstv %s382_s12 }
  0x11   :  { %475 = vmatpush3.bf16.msra.mxu1 %v508_v15  ;;  %454 = vmatprep.subr.bf16.mxu0 %v509_v16 }
  0x12   :  { %476 = vmatprep.subr.bf16.mxu1 %v510_v17 }
  0x14   :  { %455 = vmatpush3.bf16.msra.mxu0 %v511_v18 }
  0x15   :  { %477 = vmatpush3.bf16.msra.mxu1 %v512_v19  ;;  %456 = vmatprep.subr.bf16.mxu0 %v513_v20 }
  0x16   :  { %478 = vmatprep.subr.bf16.mxu1 %v514_v21 }
  0x18   :  { %457 = vmatpush3.bf16.msra.mxu0 %v515_v22 }
  0x19   :  { %479 = vmatpush3.bf16.msra.mxu1 %v516_v23  ;;  %458 = vmatprep.subr.bf16.mxu0 %v517_v24 }
  0x1a   :  { %480 = vmatprep.subr.bf16.mxu1 %v518_v25 }
  0x1c   :  { %459 = vmatpush3.bf16.msra.mxu0 %v519_v26 }
  0x1d   :  { %481 = vmatpush3.bf16.msra.mxu1 %v520_v27  ;;  %460 = vmatprep.subr.bf16.mxu0 %v521_v28 }
  0x1e   :  { %482 = vmatprep.subr.bf16.mxu1 %v522_v29 }
  0x20   :  { %461 = vmatpush3.bf16.msra.mxu0 %v523_v30 }
  0x21   :  { %483 = vmatpush3.bf16.msra.mxu1 %v524_v31 }
  0x23   :  { %331 = vmatmul.mubr.bf16.vlgmr.msra.gmra.mrb[0].mxu0 %v525_v32 }
  0x24   :  { %372 = vmatmul.mubr.bf16.vlgmr.msra.gmra.mrb[0].mxu1 %v528_v34 }
  0xf6   :  { %v462_v36 = vpop.f32.mrb[0].mxu0 }
  0xf7   :  { %v484_v37 = vpop.f32.mrb[0].mxu1  ;;  %v463_v38 = vpop.f32.mrb[1].mxu0 }
  0xf8   :  { %v464_v39 = vadd.f32 %v463_v38, %v462_v36  ;;  %v485_v40 = vpop.f32.mrb[1].mxu1  ;;  %v465_v41 = vpop.f32.mrb[2].mxu0 }
  0xf9   :  { %v486_v42 = vadd.f32 %v485_v40, %v484_v37  ;;  %v487_v43 = vpop.f32.mrb[2].mxu1  ;;  %v466_v44 = vpop.f32.mrb[3].mxu0 }
  0xfa   :  { %v467_v45 = vadd.f32 %v466_v44, %v465_v41  ;;  %v488_v46 = vpop.f32.mrb[3].mxu1 }
  0xfb   :  { %v374_v48 = vadd.f32 %v486_v42, %v464_v39  ;;  %v489_v49 = vadd.f32 %v488_v46, %v487_v43 }
  0xfd   :  { %v377_v50 = vadd.f32 %v489_v49, %v467_v45  ;;  %v384_v51 = vmul.f32 %v383_v47, %v374_v48 }
  0xff   :  { %v385_v52 = vmul.f32 %v383_v47, %v377_v50  ;;  %386 = vst [vmem:[%s680_s3] sm:$0xff] %v384_v51  ;;  %v388_v53 = vand.u32 2147483647, %v384_v51 }
 0x101   :  { %387 = vst [vmem:[%s680_s3 + $0x8] sm:$0xff] %v385_v52  ;;  %v389_v54 = vand.u32 2147483647, %v385_v52 }
 0x103   :  { %v390_v55 = vmax.f32.f32 %v388_v53, %v389_v54 }
 0x105   :  { %391 = vmax.xlane.f32.xlu0 %v390_v55 }
 0x192   :  { %v392_v56 = vpop.xlane.xlu0 %391 }
 0x193   :  { %v393_v57 = vrot.slane %v392_v56, 4 }
 0x195   :  { %v394_v58 = vmax.f32 %v392_v56, %v393_v57 }
 0x197   :  { %v395_v59 = vrot.slane %v394_v58, 2 }
 0x199   :  { %v396_v60 = vmax.f32 %v394_v58, %v395_v59 }
 0x19b   :  { %v397_v61 = vrot.slane %v396_v60, 1 }
 0x19d   :  { %v398_v62 = vmax.f32 %v396_v60, %v397_v61 }
 0x19f   :  { %490 = vpush %v398_v62 }
 0x1d0   :  { %s491_s15 = spop %490 }
 0x1d1   :  { %v400_v63 = vstv %s491_s15 }
 0x1d2   :  { %401 = vst [vmem:[%s681_s4] sm:$0xff] %v400_v63 }

</bundles_post_ra>
